<compile_context>
chip_gen: v7x
topology: tpu7x:2x2x1
jax: 0.10.0
libtpu: 0.0.40
codegen_flags: <defaults>
</compile_context>

<pallas_src>
import math
import jax
import jax.numpy as jnp
from jax import lax
from jax.experimental import pallas as pl
from jax.experimental.pallas import tpu as pltpu

# ---------------- small config (mirrors BertConfig fields used) -------------
VOCAB = 8          # config.vocab_size
MAX_POS = 16       # config.max_position_embeddings
TYPE_VOCAB = 2     # config.type_vocab_size
HIDDEN = 32        # config.hidden_size
NUM_HEADS = 4      # config.num_attention_heads
HEAD_DIM = HIDDEN // NUM_HEADS
INTER = 64         # config.intermediate_size
NUM_LAYERS = 2     # config.num_hidden_layers
EPS = 1e-12
NEG_INF = -1e9     # cross-batch attention blocker (exp underflows to 0 exactly)

BATCH = 2
SEQ = 8


# ---------------- in-kernel helpers -----------------------------------------
def _layernorm(x, gamma, beta):
    # matches BertLayerNorm: biased variance, eps inside sqrt; rsqrt -> EUP
    u = jnp.mean(x, axis=-1, keepdims=True)
    s = jnp.mean((x - u) ** 2, axis=-1, keepdims=True)
    return gamma * ((x - u) * lax.rsqrt(s + EPS)) + beta


def _gelu(x):
    # exact erf-based gelu, as in the reference `gelu` function
    return x * 0.5 * (1.0 + lax.erf(x / math.sqrt(2.0)))


# ---------------- fused whole-model Pallas kernel ----------------------------
def fused_bert_kernel(wid_ref, pid_ref, tid_ref, mask_ref,
                      etbl_ref, eg_ref, ebeta_ref,
                      wqkv_ref, bqkv_ref, wo_ref, bo_ref, g1_ref, be1_ref,
                      wi_ref, bi_ref, w2_ref, b2o_ref, g2_ref, be2_ref,
                      wp_ref, bp_ref,
                      layers_ref, pooled_ref,
                      ctx_ref):
    BS = wid_ref.shape[0]                # B * S tokens (sublane axis)
    E, H = etbl_ref.shape                # fused embedding table rows / hidden
    L = wqkv_ref.shape[0]                # number of encoder layers
    B = pooled_ref.shape[0]
    S = BS // B
    NH = NUM_HEADS
    HD = H // NH

    # ---- BertEmbeddings: fused one-hot gather (word + pos + type) -----------
    # ids are pre-offset into the concatenated table, so the summed one-hot
    # times the table is exactly word_emb[id] + pos_emb[pos] + type_emb[type].
    iota_e = lax.broadcasted_iota(jnp.int32, (BS, E), 1)
    onehot = ((iota_e == wid_ref[...]).astype(jnp.float32)
              + (iota_e == pid_ref[...]).astype(jnp.float32)
              + (iota_e == tid_ref[...]).astype(jnp.float32))
    h = jnp.dot(onehot, etbl_ref[...], preferred_element_type=jnp.float32)
    h = _layernorm(h, eg_ref[...], ebeta_ref[...])
    # dropout is identity in eval mode.

    mask2d = mask_ref[...]               # (BS, BS) additive mask (block-diag)

    # ---- BertEncoder (static unrolled layer loop, everything VMEM-resident) -
    for l in range(L):
        # fused QKV projection; 1/sqrt(HD) already folded into the Q third.
        qkv = jnp.dot(h, wqkv_ref[l], preferred_element_type=jnp.float32) + bqkv_ref[l]
        q = qkv[:, 0:H]
        k = qkv[:, H:2 * H]
        v = qkv[:, 2 * H:3 * H]

        # whole-batch attention per head: one (BS,BS) score matmul per head,
        # cross-batch pairs suppressed by the additive -1e9 mask.
        for hh in range(NH):
            lo = hh * HD
            hi = lo + HD
            qh = q[:, lo:hi]
            kh = k[:, lo:hi]
            vh = v[:, lo:hi]
            scores = lax.dot_general(qh, kh, (((1,), (1,)), ((), ())),
                                     preferred_element_type=jnp.float32)
            scores = scores + mask2d
            m = jnp.max(scores, axis=-1, keepdims=True)
            e = jnp.exp(scores - m)
            denom = jnp.sum(e, axis=-1, keepdims=True)
            probs = e * pl.reciprocal(denom, approx=True)
            # write head output straight into the VMEM scratch slice
            ctx_ref[:, lo:hi] = jnp.dot(probs, vh,
                                        preferred_element_type=jnp.float32)

        # BertSelfOutput
        attn = jnp.dot(ctx_ref[...], wo_ref[l],
                       preferred_element_type=jnp.float32) + bo_ref[l]
        h = _layernorm(attn + h, g1_ref[l], be1_ref[l])

        # BertIntermediate
        inter = _gelu(jnp.dot(h, wi_ref[l],
                              preferred_element_type=jnp.float32) + bi_ref[l])

        # BertOutput
        out = jnp.dot(inter, w2_ref[l],
                      preferred_element_type=jnp.float32) + b2o_ref[l]
        h = _layernorm(out + h, g2_ref[l], be2_ref[l])

        layers_ref[l] = h                # (BS, H) slab per layer

    # ---- BertPooler: select first token per sequence via one-hot matmul -----
    row_sel = (lax.broadcasted_iota(jnp.int32, (B, BS), 1)
               == S * lax.broadcasted_iota(jnp.int32, (B, BS), 0)
               ).astype(jnp.float32)
    first = jnp.dot(row_sel, h, preferred_element_type=jnp.float32)   # (B, H)
    pooled = jnp.tanh(jnp.dot(first, wp_ref[...],
                              preferred_element_type=jnp.float32) + bp_ref[...])
    pooled_ref[...] = pooled


# ---------------- parameter construction (deterministic) ---------------------
def init_params(key):
    def nrm(k, shape, scale=0.02):
        return (scale * jax.random.normal(k, shape)).astype(jnp.float32)

    keys = jax.random.split(key, 8 + NUM_LAYERS)
    word_emb = nrm(keys[0], (VOCAB, HIDDEN))
    word_emb = word_emb.at[0].set(0.0)          # padding_idx=0
    params = {
        "word_emb": word_emb,
        "pos_emb": nrm(keys[1], (MAX_POS, HIDDEN)),
        "type_emb": nrm(keys[2], (TYPE_VOCAB, HIDDEN)),
        "emb_ln_g": jnp.ones((1, HIDDEN), jnp.float32),
        "emb_ln_b": jnp.zeros((1, HIDDEN), jnp.float32),
        "pool_w": nrm(keys[3], (HIDDEN, HIDDEN)),
        "pool_b": jnp.zeros((1, HIDDEN), jnp.float32),
        "layers": [],
    }
    for l in range(NUM_LAYERS):
        lk = jax.random.split(keys[8 + l], 6)
        params["layers"].append({
            "wq": nrm(lk[0], (HIDDEN, HIDDEN)), "bq": jnp.zeros((1, HIDDEN), jnp.float32),
            "wk": nrm(lk[1], (HIDDEN, HIDDEN)), "bk": jnp.zeros((1, HIDDEN), jnp.float32),
            "wv": nrm(lk[2], (HIDDEN, HIDDEN)), "bv": jnp.zeros((1, HIDDEN), jnp.float32),
            "wo": nrm(lk[3], (HIDDEN, HIDDEN)), "bo": jnp.zeros((1, HIDDEN), jnp.float32),
            "ln1_g": jnp.ones((1, HIDDEN), jnp.float32),
            "ln1_b": jnp.zeros((1, HIDDEN), jnp.float32),
            "wi": nrm(lk[4], (HIDDEN, INTER)), "bi": jnp.zeros((1, INTER), jnp.float32),
            "w2": nrm(lk[5], (INTER, HIDDEN)), "b2": jnp.zeros((1, HIDDEN), jnp.float32),
            "ln2_g": jnp.ones((1, HIDDEN), jnp.float32),
            "ln2_b": jnp.zeros((1, HIDDEN), jnp.float32),
        })
    return params


def pack_params(params):
    """One-time repacking: fused embedding table, fused+scaled QKV weights,
    and per-layer params stacked along a leading layer axis."""
    inv = 1.0 / math.sqrt(HEAD_DIM)
    layers = params["layers"]

    def stack(key):
        return jnp.stack([lp[key] for lp in layers], axis=0)

    wqkv = jnp.stack([jnp.concatenate([lp["wq"] * inv, lp["wk"], lp["wv"]],
                                      axis=1) for lp in layers], axis=0)
    bqkv = jnp.stack([jnp.concatenate([lp["bq"] * inv, lp["bk"], lp["bv"]],
                                      axis=1) for lp in layers], axis=0)
    return {
        "emb_table": jnp.concatenate([params["word_emb"], params["pos_emb"],
                                      params["type_emb"]], axis=0),
        "emb_ln_g": params["emb_ln_g"], "emb_ln_b": params["emb_ln_b"],
        "wqkv": wqkv, "bqkv": bqkv,
        "wo": stack("wo"), "bo": stack("bo"),
        "ln1_g": stack("ln1_g"), "ln1_b": stack("ln1_b"),
        "wi": stack("wi"), "bi": stack("bi"),
        "w2": stack("w2"), "b2": stack("b2"),
        "ln2_g": stack("ln2_g"), "ln2_b": stack("ln2_b"),
        "pool_w": params["pool_w"], "pool_b": params["pool_b"],
    }


# ---------------- full model forward (single fused pallas_call) --------------
def bert_model(packed, input_ids, token_type_ids=None, attention_mask=None,
               output_all_encoded_layers=True):
    B, S = input_ids.shape
    BS = B * S
    if attention_mask is None:
        attention_mask = jnp.ones_like(input_ids)
    if token_type_ids is None:
        token_type_ids = jnp.zeros_like(input_ids)

    # token / position / type ids, pre-offset into the fused embedding table
    word_ids = input_ids.reshape(BS, 1).astype(jnp.int32)
    pos_ids = (jnp.tile(jnp.arange(S, dtype=jnp.int32), B) + VOCAB).reshape(BS, 1)
    type_ids = token_type_ids.reshape(BS, 1).astype(jnp.int32) + (VOCAB + MAX_POS)

    # block-diagonal additive attention mask over the flattened token axis:
    # within-batch entries carry (1 - mask) * -10000, cross-batch entries -1e9.
    ext = (1.0 - attention_mask.astype(jnp.float32)) * -10000.0       # (B, S)
    row_batch = jnp.repeat(jnp.arange(B, dtype=jnp.int32), S)          # (BS,)
    same_batch = row_batch[:, None] == row_batch[None, :]              # (BS, BS)
    mask2d = jnp.where(same_batch, ext.reshape(1, BS), NEG_INF).astype(jnp.float32)

    layers_flat, pooled = pl.pallas_call(
        fused_bert_kernel,
        out_shape=(jax.ShapeDtypeStruct((NUM_LAYERS, BS, HIDDEN), jnp.float32),
                   jax.ShapeDtypeStruct((B, HIDDEN), jnp.float32)),
        scratch_shapes=[pltpu.VMEM((BS, HIDDEN), jnp.float32)],   # ctx scratch
    )(word_ids, pos_ids, type_ids, mask2d,
      packed["emb_table"], packed["emb_ln_g"], packed["emb_ln_b"],
      packed["wqkv"], packed["bqkv"], packed["wo"], packed["bo"],
      packed["ln1_g"], packed["ln1_b"], packed["wi"], packed["bi"],
      packed["w2"], packed["b2"], packed["ln2_g"], packed["ln2_b"],
      packed["pool_w"], packed["pool_b"])

    encoded = [layers_flat[l].reshape(B, S, HIDDEN) for l in range(NUM_LAYERS)]

    if not output_all_encoded_layers:
        return encoded[-1], pooled
    return encoded, pooled


# ---------------- main --------------------------------------------------------
if __name__ == "__main__":
    key = jax.random.PRNGKey(0)
    pkey, dkey = jax.random.split(key)
    params = init_params(pkey)
    packed = pack_params(params)        # one-time host-side repacking

    input_ids = jax.random.randint(dkey, (BATCH, SEQ), minval=1, maxval=VOCAB,
                                   dtype=jnp.int32)
    token_type_ids = jnp.zeros((BATCH, SEQ), jnp.int32)
    attention_mask = jnp.ones((BATCH, SEQ), jnp.int32)

    encoded_layers, pooled = bert_model(packed, input_ids, token_type_ids,
                                        attention_mask,
                                        output_all_encoded_layers=True)
    jax.block_until_ready(encoded_layers)
    jax.block_until_ready(pooled)

    assert len(encoded_layers) == NUM_LAYERS
    assert encoded_layers[-1].shape == (BATCH, SEQ, HIDDEN)
    assert pooled.shape == (BATCH, HIDDEN)
    print("KERNEL_OK")
</pallas_src>

<mosaic_0001>
module attributes {stable_mosaic.version = 11 : i64} {
  func.func @fused_bert_kernel(%arg0: memref<16x1xi32, #tpu.memory_space<vmem>>, %arg1: memref<16x1xi32, #tpu.memory_space<vmem>>, %arg2: memref<16x1xi32, #tpu.memory_space<vmem>>, %arg3: memref<16x16xf32, #tpu.memory_space<vmem>>, %arg4: memref<26x32xf32, #tpu.memory_space<vmem>>, %arg5: memref<1x32xf32, #tpu.memory_space<vmem>>, %arg6: memref<1x32xf32, #tpu.memory_space<vmem>>, %arg7: memref<2x32x96xf32, #tpu.memory_space<vmem>>, %arg8: memref<2x1x96xf32, #tpu.memory_space<vmem>>, %arg9: memref<2x32x32xf32, #tpu.memory_space<vmem>>, %arg10: memref<2x1x32xf32, #tpu.memory_space<vmem>>, %arg11: memref<2x1x32xf32, #tpu.memory_space<vmem>>, %arg12: memref<2x1x32xf32, #tpu.memory_space<vmem>>, %arg13: memref<2x32x64xf32, #tpu.memory_space<vmem>>, %arg14: memref<2x1x64xf32, #tpu.memory_space<vmem>>, %arg15: memref<2x64x32xf32, #tpu.memory_space<vmem>>, %arg16: memref<2x1x32xf32, #tpu.memory_space<vmem>>, %arg17: memref<2x1x32xf32, #tpu.memory_space<vmem>>, %arg18: memref<2x1x32xf32, #tpu.memory_space<vmem>>, %arg19: memref<32x32xf32, #tpu.memory_space<vmem>>, %arg20: memref<1x32xf32, #tpu.memory_space<vmem>>, %arg21: memref<2x16x32xf32, #tpu.memory_space<vmem>>, %arg22: memref<2x32xf32, #tpu.memory_space<vmem>>, %arg23: memref<16x32xf32, #tpu.memory_space<vmem>>) attributes {dimension_semantics = [], scalar_prefetch = 0 : i64, scratch_operands = 1 : i64, tpu.core_type = #tpu.core_type<tc>} {
    %0 = tpu.iota {dimensions = array<i32: 1>} : vector<16x26xi32>
    %c0 = arith.constant 0 : index
    %c0_0 = arith.constant 0 : index
    %1 = vector.load %arg0[%c0, %c0_0] : memref<16x1xi32, #tpu.memory_space<vmem>>, vector<16x1xi32>
    %2 = vector.broadcast %1 : vector<16x1xi32> to vector<16x26xi32>
    %3 = arith.cmpi eq, %0, %2 : vector<16x26xi32>
    %4 = arith.extui %3 : vector<16x26xi1> to vector<16x26xi32>
    %5 = arith.sitofp %4 : vector<16x26xi32> to vector<16x26xf32>
    %c0_1 = arith.constant 0 : index
    %c0_2 = arith.constant 0 : index
    %6 = vector.load %arg1[%c0_1, %c0_2] : memref<16x1xi32, #tpu.memory_space<vmem>>, vector<16x1xi32>
    %7 = vector.broadcast %6 : vector<16x1xi32> to vector<16x26xi32>
    %8 = arith.cmpi eq, %0, %7 : vector<16x26xi32>
    %9 = arith.extui %8 : vector<16x26xi1> to vector<16x26xi32>
    %10 = arith.sitofp %9 : vector<16x26xi32> to vector<16x26xf32>
    %11 = arith.addf %5, %10 : vector<16x26xf32>
    %c0_3 = arith.constant 0 : index
    %c0_4 = arith.constant 0 : index
    %12 = vector.load %arg2[%c0_3, %c0_4] : memref<16x1xi32, #tpu.memory_space<vmem>>, vector<16x1xi32>
    %13 = vector.broadcast %12 : vector<16x1xi32> to vector<16x26xi32>
    %14 = arith.cmpi eq, %0, %13 : vector<16x26xi32>
    %15 = arith.extui %14 : vector<16x26xi1> to vector<16x26xi32>
    %16 = arith.sitofp %15 : vector<16x26xi32> to vector<16x26xf32>
    %17 = arith.addf %11, %16 : vector<16x26xf32>
    %c0_5 = arith.constant 0 : index
    %c0_6 = arith.constant 0 : index
    %18 = vector.load %arg4[%c0_5, %c0_6] : memref<26x32xf32, #tpu.memory_space<vmem>>, vector<26x32xf32>
    %cst = arith.constant dense<0.000000e+00> : vector<16x32xf32>
    %19 = tpu.matmul %17, %18, %cst {dimension_numbers = #tpu.dot_dimension_numbers<[1], [0], [0], [1], [0, 0, 1, 1], [], []>} : vector<16x26xf32>, vector<26x32xf32>, vector<16x32xf32> -> vector<16x32xf32>
    %c0_7 = arith.constant 0 : index
    %c0_8 = arith.constant 0 : index
    %20 = vector.load %arg5[%c0_7, %c0_8] : memref<1x32xf32, #tpu.memory_space<vmem>>, vector<1x32xf32>
    %c0_9 = arith.constant 0 : index
    %c0_10 = arith.constant 0 : index
    %21 = vector.load %arg6[%c0_9, %c0_10] : memref<1x32xf32, #tpu.memory_space<vmem>>, vector<1x32xf32>
    %cst_11 = arith.constant dense<0.000000e+00> : vector<16xf32>
    %22 = vector.multi_reduction <add>, %19, %cst_11 [1] : vector<16x32xf32> to vector<16xf32>
    %23 = vector.shape_cast %22 : vector<16xf32> to vector<16x1xf32>
    %cst_12 = arith.constant 3.200000e+01 : f32
    %24 = vector.broadcast %cst_12 : f32 to vector<16x1xf32>
    %25 = arith.divf %23, %24 : vector<16x1xf32>
    %26 = vector.broadcast %25 : vector<16x1xf32> to vector<16x32xf32>
    %27 = arith.subf %19, %26 : vector<16x32xf32>
    %28 = arith.mulf %27, %27 : vector<16x32xf32>
    %cst_13 = arith.constant dense<0.000000e+00> : vector<16xf32>
    %29 = vector.multi_reduction <add>, %28, %cst_13 [1] : vector<16x32xf32> to vector<16xf32>
    %30 = vector.shape_cast %29 : vector<16xf32> to vector<16x1xf32>
    %cst_14 = arith.constant 3.200000e+01 : f32
    %31 = vector.broadcast %cst_14 : f32 to vector<16x1xf32>
    %32 = arith.divf %30, %31 : vector<16x1xf32>
    %33 = vector.broadcast %25 : vector<16x1xf32> to vector<16x32xf32>
    %34 = arith.subf %19, %33 : vector<16x32xf32>
    %cst_15 = arith.constant 9.99999996E-13 : f32
    %35 = vector.broadcast %cst_15 : f32 to vector<16x1xf32>
    %36 = arith.addf %32, %35 : vector<16x1xf32>
    %37 = math.rsqrt %36 : vector<16x1xf32>
    %38 = vector.broadcast %37 : vector<16x1xf32> to vector<16x32xf32>
    %39 = arith.mulf %34, %38 : vector<16x32xf32>
    %40 = vector.broadcast %20 : vector<1x32xf32> to vector<16x32xf32>
    %41 = arith.mulf %40, %39 : vector<16x32xf32>
    %42 = vector.broadcast %21 : vector<1x32xf32> to vector<16x32xf32>
    %43 = arith.addf %41, %42 : vector<16x32xf32>
    %c0_16 = arith.constant 0 : index
    %c0_17 = arith.constant 0 : index
    %44 = vector.load %arg3[%c0_16, %c0_17] : memref<16x16xf32, #tpu.memory_space<vmem>>, vector<16x16xf32>
    %c0_18 = arith.constant 0 : index
    %c0_19 = arith.constant 0 : index
    %c0_20 = arith.constant 0 : index
    %45 = vector.load %arg7[%c0_18, %c0_19, %c0_20] : memref<2x32x96xf32, #tpu.memory_space<vmem>>, vector<1x32x96xf32>
    %46 = vector.shape_cast %45 : vector<1x32x96xf32> to vector<32x96xf32>
    %cst_21 = arith.constant dense<0.000000e+00> : vector<16x96xf32>
    %47 = tpu.matmul %43, %46, %cst_21 {dimension_numbers = #tpu.dot_dimension_numbers<[1], [0], [0], [1], [0, 0, 1, 1], [], []>} : vector<16x32xf32>, vector<32x96xf32>, vector<16x96xf32> -> vector<16x96xf32>
    %c0_22 = arith.constant 0 : index
    %c0_23 = arith.constant 0 : index
    %c0_24 = arith.constant 0 : index
    %48 = vector.load %arg8[%c0_22, %c0_23, %c0_24] : memref<2x1x96xf32, #tpu.memory_space<vmem>>, vector<1x1x96xf32>
    %49 = vector.shape_cast %48 : vector<1x1x96xf32> to vector<1x96xf32>
    %50 = vector.broadcast %49 : vector<1x96xf32> to vector<16x96xf32>
    %51 = arith.addf %47, %50 : vector<16x96xf32>
    %52 = vector.extract_strided_slice %51 {offsets = [0, 0], sizes = [16, 32], strides = [1, 1]} : vector<16x96xf32> to vector<16x32xf32>
    %53 = vector.extract_strided_slice %51 {offsets = [0, 32], sizes = [16, 32], strides = [1, 1]} : vector<16x96xf32> to vector<16x32xf32>
    %54 = vector.extract_strided_slice %51 {offsets = [0, 64], sizes = [16, 32], strides = [1, 1]} : vector<16x96xf32> to vector<16x32xf32>
    %55 = vector.extract_strided_slice %52 {offsets = [0, 0], sizes = [16, 8], strides = [1, 1]} : vector<16x32xf32> to vector<16x8xf32>
    %56 = vector.extract_strided_slice %53 {offsets = [0, 0], sizes = [16, 8], strides = [1, 1]} : vector<16x32xf32> to vector<16x8xf32>
    %57 = vector.extract_strided_slice %54 {offsets = [0, 0], sizes = [16, 8], strides = [1, 1]} : vector<16x32xf32> to vector<16x8xf32>
    %cst_25 = arith.constant dense<0.000000e+00> : vector<16x16xf32>
    %58 = tpu.matmul %55, %56, %cst_25 {dimension_numbers = #tpu.dot_dimension_numbers<[1], [1], [0], [0], [0, 0, 1, 0], [], []>} : vector<16x8xf32>, vector<16x8xf32>, vector<16x16xf32> -> vector<16x16xf32>
    %59 = arith.addf %58, %44 : vector<16x16xf32>
    %cst_26 = arith.constant dense<0xFF800000> : vector<16xf32>
    %60 = vector.multi_reduction <maximumf>, %59, %cst_26 [1] : vector<16x16xf32> to vector<16xf32>
    %61 = vector.shape_cast %60 : vector<16xf32> to vector<16x1xf32>
    %62 = vector.broadcast %61 : vector<16x1xf32> to vector<16x16xf32>
    %63 = arith.subf %59, %62 : vector<16x16xf32>
    %64 = math.exp %63 : vector<16x16xf32>
    %cst_27 = arith.constant dense<0.000000e+00> : vector<16xf32>
    %65 = vector.multi_reduction <add>, %64, %cst_27 [1] : vector<16x16xf32> to vector<16xf32>
    %66 = vector.shape_cast %65 : vector<16xf32> to vector<16x1xf32>
    %67 = tpu.reciprocal %66 {approx = true} : vector<16x1xf32> -> vector<16x1xf32>
    %68 = vector.broadcast %67 : vector<16x1xf32> to vector<16x16xf32>
    %69 = arith.mulf %64, %68 : vector<16x16xf32>
    %cst_28 = arith.constant dense<0.000000e+00> : vector<16x8xf32>
    %70 = tpu.matmul %69, %57, %cst_28 {dimension_numbers = #tpu.dot_dimension_numbers<[1], [0], [0], [1], [0, 0, 1, 1], [], []>} : vector<16x16xf32>, vector<16x8xf32>, vector<16x8xf32> -> vector<16x8xf32>
    %c0_29 = arith.constant 0 : index
    %c0_30 = arith.constant 0 : index
    %71 = vector.load %arg23[%c0_29, %c0_30] : memref<16x32xf32, #tpu.memory_space<vmem>>, vector<16x8xf32>
    tpu.vector_store %arg23[%c0_29, %c0_30], %70 {strides = array<i32>} : memref<16x32xf32, #tpu.memory_space<vmem>>, vector<16x8xf32>,
    %72 = vector.extract_strided_slice %52 {offsets = [0, 8], sizes = [16, 8], strides = [1, 1]} : vector<16x32xf32> to vector<16x8xf32>
    %73 = vector.extract_strided_slice %53 {offsets = [0, 8], sizes = [16, 8], strides = [1, 1]} : vector<16x32xf32> to vector<16x8xf32>
    %74 = vector.extract_strided_slice %54 {offsets = [0, 8], sizes = [16, 8], strides = [1, 1]} : vector<16x32xf32> to vector<16x8xf32>
    %cst_31 = arith.constant dense<0.000000e+00> : vector<16x16xf32>
    %75 = tpu.matmul %72, %73, %cst_31 {dimension_numbers = #tpu.dot_dimension_numbers<[1], [1], [0], [0], [0, 0, 1, 0], [], []>} : vector<16x8xf32>, vector<16x8xf32>, vector<16x16xf32> -> vector<16x16xf32>
    %76 = arith.addf %75, %44 : vector<16x16xf32>
    %cst_32 = arith.constant dense<0xFF800000> : vector<16xf32>
    %77 = vector.multi_reduction <maximumf>, %76, %cst_32 [1] : vector<16x16xf32> to vector<16xf32>
    %78 = vector.shape_cast %77 : vector<16xf32> to vector<16x1xf32>
    %79 = vector.broadcast %78 : vector<16x1xf32> to vector<16x16xf32>
    %80 = arith.subf %76, %79 : vector<16x16xf32>
    %81 = math.exp %80 : vector<16x16xf32>
    %cst_33 = arith.constant dense<0.000000e+00> : vector<16xf32>
    %82 = vector.multi_reduction <add>, %81, %cst_33 [1] : vector<16x16xf32> to vector<16xf32>
    %83 = vector.shape_cast %82 : vector<16xf32> to vector<16x1xf32>
    %84 = tpu.reciprocal %83 {approx = true} : vector<16x1xf32> -> vector<16x1xf32>
    %85 = vector.broadcast %84 : vector<16x1xf32> to vector<16x16xf32>
    %86 = arith.mulf %81, %85 : vector<16x16xf32>
    %cst_34 = arith.constant dense<0.000000e+00> : vector<16x8xf32>
    %87 = tpu.matmul %86, %74, %cst_34 {dimension_numbers = #tpu.dot_dimension_numbers<[1], [0], [0], [1], [0, 0, 1, 1], [], []>} : vector<16x16xf32>, vector<16x8xf32>, vector<16x8xf32> -> vector<16x8xf32>
    %c0_35 = arith.constant 0 : index
    %c8 = arith.constant 8 : index
    %88 = vector.load %arg23[%c0_35, %c8] : memref<16x32xf32, #tpu.memory_space<vmem>>, vector<16x8xf32>
    tpu.vector_store %arg23[%c0_35, %c8], %87 {strides = array<i32>} : memref<16x32xf32, #tpu.memory_space<vmem>>, vector<16x8xf32>,
    %89 = vector.extract_strided_slice %52 {offsets = [0, 16], sizes = [16, 8], strides = [1, 1]} : vector<16x32xf32> to vector<16x8xf32>
    %90 = vector.extract_strided_slice %53 {offsets = [0, 16], sizes = [16, 8], strides = [1, 1]} : vector<16x32xf32> to vector<16x8xf32>
    %91 = vector.extract_strided_slice %54 {offsets = [0, 16], sizes = [16, 8], strides = [1, 1]} : vector<16x32xf32> to vector<16x8xf32>
    %cst_36 = arith.constant dense<0.000000e+00> : vector<16x16xf32>
    %92 = tpu.matmul %89, %90, %cst_36 {dimension_numbers = #tpu.dot_dimension_numbers<[1], [1], [0], [0], [0, 0, 1, 0], [], []>} : vector<16x8xf32>, vector<16x8xf32>, vector<16x16xf32> -> vector<16x16xf32>
    %93 = arith.addf %92, %44 : vector<16x16xf32>
    %cst_37 = arith.constant dense<0xFF800000> : vector<16xf32>
    %94 = vector.multi_reduction <maximumf>, %93, %cst_37 [1] : vector<16x16xf32> to vector<16xf32>
    %95 = vector.shape_cast %94 : vector<16xf32> to vector<16x1xf32>
    %96 = vector.broadcast %95 : vector<16x1xf32> to vector<16x16xf32>
    %97 = arith.subf %93, %96 : vector<16x16xf32>
    %98 = math.exp %97 : vector<16x16xf32>
    %cst_38 = arith.constant dense<0.000000e+00> : vector<16xf32>
    %99 = vector.multi_reduction <add>, %98, %cst_38 [1] : vector<16x16xf32> to vector<16xf32>
    %100 = vector.shape_cast %99 : vector<16xf32> to vector<16x1xf32>
    %101 = tpu.reciprocal %100 {approx = true} : vector<16x1xf32> -> vector<16x1xf32>
    %102 = vector.broadcast %101 : vector<16x1xf32> to vector<16x16xf32>
    %103 = arith.mulf %98, %102 : vector<16x16xf32>
    %cst_39 = arith.constant dense<0.000000e+00> : vector<16x8xf32>
    %104 = tpu.matmul %103, %91, %cst_39 {dimension_numbers = #tpu.dot_dimension_numbers<[1], [0], [0], [1], [0, 0, 1, 1], [], []>} : vector<16x16xf32>, vector<16x8xf32>, vector<16x8xf32> -> vector<16x8xf32>
    %c0_40 = arith.constant 0 : index
    %c16 = arith.constant 16 : index
    %105 = vector.load %arg23[%c0_40, %c16] : memref<16x32xf32, #tpu.memory_space<vmem>>, vector<16x8xf32>
    tpu.vector_store %arg23[%c0_40, %c16], %104 {strides = array<i32>} : memref<16x32xf32, #tpu.memory_space<vmem>>, vector<16x8xf32>,
    %106 = vector.extract_strided_slice %52 {offsets = [0, 24], sizes = [16, 8], strides = [1, 1]} : vector<16x32xf32> to vector<16x8xf32>
    %107 = vector.extract_strided_slice %53 {offsets = [0, 24], sizes = [16, 8], strides = [1, 1]} : vector<16x32xf32> to vector<16x8xf32>
    %108 = vector.extract_strided_slice %54 {offsets = [0, 24], sizes = [16, 8], strides = [1, 1]} : vector<16x32xf32> to vector<16x8xf32>
    %cst_41 = arith.constant dense<0.000000e+00> : vector<16x16xf32>
    %109 = tpu.matmul %106, %107, %cst_41 {dimension_numbers = #tpu.dot_dimension_numbers<[1], [1], [0], [0], [0, 0, 1, 0], [], []>} : vector<16x8xf32>, vector<16x8xf32>, vector<16x16xf32> -> vector<16x16xf32>
    %110 = arith.addf %109, %44 : vector<16x16xf32>
    %cst_42 = arith.constant dense<0xFF800000> : vector<16xf32>
    %111 = vector.multi_reduction <maximumf>, %110, %cst_42 [1] : vector<16x16xf32> to vector<16xf32>
    %112 = vector.shape_cast %111 : vector<16xf32> to vector<16x1xf32>
    %113 = vector.broadcast %112 : vector<16x1xf32> to vector<16x16xf32>
    %114 = arith.subf %110, %113 : vector<16x16xf32>
    %115 = math.exp %114 : vector<16x16xf32>
    %cst_43 = arith.constant dense<0.000000e+00> : vector<16xf32>
    %116 = vector.multi_reduction <add>, %115, %cst_43 [1] : vector<16x16xf32> to vector<16xf32>
    %117 = vector.shape_cast %116 : vector<16xf32> to vector<16x1xf32>
    %118 = tpu.reciprocal %117 {approx = true} : vector<16x1xf32> -> vector<16x1xf32>
    %119 = vector.broadcast %118 : vector<16x1xf32> to vector<16x16xf32>
    %120 = arith.mulf %115, %119 : vector<16x16xf32>
    %cst_44 = arith.constant dense<0.000000e+00> : vector<16x8xf32>
    %121 = tpu.matmul %120, %108, %cst_44 {dimension_numbers = #tpu.dot_dimension_numbers<[1], [0], [0], [1], [0, 0, 1, 1], [], []>} : vector<16x16xf32>, vector<16x8xf32>, vector<16x8xf32> -> vector<16x8xf32>
    %c0_45 = arith.constant 0 : index
    %c24 = arith.constant 24 : index
    %122 = vector.load %arg23[%c0_45, %c24] : memref<16x32xf32, #tpu.memory_space<vmem>>, vector<16x8xf32>
    tpu.vector_store %arg23[%c0_45, %c24], %121 {strides = array<i32>} : memref<16x32xf32, #tpu.memory_space<vmem>>, vector<16x8xf32>,
    %c0_46 = arith.constant 0 : index
    %c0_47 = arith.constant 0 : index
    %123 = vector.load %arg23[%c0_46, %c0_47] : memref<16x32xf32, #tpu.memory_space<vmem>>, vector<16x32xf32>
    %c0_48 = arith.constant 0 : index
    %c0_49 = arith.constant 0 : index
    %c0_50 = arith.constant 0 : index
    %124 = vector.load %arg9[%c0_48, %c0_49, %c0_50] : memref<2x32x32xf32, #tpu.memory_space<vmem>>, vector<1x32x32xf32>
    %125 = vector.shape_cast %124 : vector<1x32x32xf32> to vector<32x32xf32>
    %cst_51 = arith.constant dense<0.000000e+00> : vector<16x32xf32>
    %126 = tpu.matmul %123, %125, %cst_51 {dimension_numbers = #tpu.dot_dimension_numbers<[1], [0], [0], [1], [0, 0, 1, 1], [], []>} : vector<16x32xf32>, vector<32x32xf32>, vector<16x32xf32> -> vector<16x32xf32>
    %c0_52 = arith.constant 0 : index
    %c0_53 = arith.constant 0 : index
    %c0_54 = arith.constant 0 : index
    %127 = vector.load %arg10[%c0_52, %c0_53, %c0_54] : memref<2x1x32xf32, #tpu.memory_space<vmem>>, vector<1x1x32xf32>
    %128 = vector.shape_cast %127 : vector<1x1x32xf32> to vector<1x32xf32>
    %129 = vector.broadcast %128 : vector<1x32xf32> to vector<16x32xf32>
    %130 = arith.addf %126, %129 : vector<16x32xf32>
    %131 = arith.addf %130, %43 : vector<16x32xf32>
    %c0_55 = arith.constant 0 : index
    %c0_56 = arith.constant 0 : index
    %c0_57 = arith.constant 0 : index
    %132 = vector.load %arg11[%c0_55, %c0_56, %c0_57] : memref<2x1x32xf32, #tpu.memory_space<vmem>>, vector<1x1x32xf32>
    %133 = vector.shape_cast %132 : vector<1x1x32xf32> to vector<1x32xf32>
    %c0_58 = arith.constant 0 : index
    %c0_59 = arith.constant 0 : index
    %c0_60 = arith.constant 0 : index
    %134 = vector.load %arg12[%c0_58, %c0_59, %c0_60] : memref<2x1x32xf32, #tpu.memory_space<vmem>>, vector<1x1x32xf32>
    %135 = vector.shape_cast %134 : vector<1x1x32xf32> to vector<1x32xf32>
    %cst_61 = arith.constant dense<0.000000e+00> : vector<16xf32>
    %136 = vector.multi_reduction <add>, %131, %cst_61 [1] : vector<16x32xf32> to vector<16xf32>
    %137 = vector.shape_cast %136 : vector<16xf32> to vector<16x1xf32>
    %cst_62 = arith.constant 3.200000e+01 : f32
    %138 = vector.broadcast %cst_62 : f32 to vector<16x1xf32>
    %139 = arith.divf %137, %138 : vector<16x1xf32>
    %140 = vector.broadcast %139 : vector<16x1xf32> to vector<16x32xf32>
    %141 = arith.subf %131, %140 : vector<16x32xf32>
    %142 = arith.mulf %141, %141 : vector<16x32xf32>
    %cst_63 = arith.constant dense<0.000000e+00> : vector<16xf32>
    %143 = vector.multi_reduction <add>, %142, %cst_63 [1] : vector<16x32xf32> to vector<16xf32>
    %144 = vector.shape_cast %143 : vector<16xf32> to vector<16x1xf32>
    %cst_64 = arith.constant 3.200000e+01 : f32
    %145 = vector.broadcast %cst_64 : f32 to vector<16x1xf32>
    %146 = arith.divf %144, %145 : vector<16x1xf32>
    %147 = vector.broadcast %139 : vector<16x1xf32> to vector<16x32xf32>
    %148 = arith.subf %131, %147 : vector<16x32xf32>
    %cst_65 = arith.constant 9.99999996E-13 : f32
    %149 = vector.broadcast %cst_65 : f32 to vector<16x1xf32>
    %150 = arith.addf %146, %149 : vector<16x1xf32>
    %151 = math.rsqrt %150 : vector<16x1xf32>
    %152 = vector.broadcast %151 : vector<16x1xf32> to vector<16x32xf32>
    %153 = arith.mulf %148, %152 : vector<16x32xf32>
    %154 = vector.broadcast %133 : vector<1x32xf32> to vector<16x32xf32>
    %155 = arith.mulf %154, %153 : vector<16x32xf32>
    %156 = vector.broadcast %135 : vector<1x32xf32> to vector<16x32xf32>
    %157 = arith.addf %155, %156 : vector<16x32xf32>
    %c0_66 = arith.constant 0 : index
    %c0_67 = arith.constant 0 : index
    %c0_68 = arith.constant 0 : index
    %158 = vector.load %arg13[%c0_66, %c0_67, %c0_68] : memref<2x32x64xf32, #tpu.memory_space<vmem>>, vector<1x32x64xf32>
    %159 = vector.shape_cast %158 : vector<1x32x64xf32> to vector<32x64xf32>
    %cst_69 = arith.constant dense<0.000000e+00> : vector<16x64xf32>
    %160 = tpu.matmul %157, %159, %cst_69 {dimension_numbers = #tpu.dot_dimension_numbers<[1], [0], [0], [1], [0, 0, 1, 1], [], []>} : vector<16x32xf32>, vector<32x64xf32>, vector<16x64xf32> -> vector<16x64xf32>
    %c0_70 = arith.constant 0 : index
    %c0_71 = arith.constant 0 : index
    %c0_72 = arith.constant 0 : index
    %161 = vector.load %arg14[%c0_70, %c0_71, %c0_72] : memref<2x1x64xf32, #tpu.memory_space<vmem>>, vector<1x1x64xf32>
    %162 = vector.shape_cast %161 : vector<1x1x64xf32> to vector<1x64xf32>
    %163 = vector.broadcast %162 : vector<1x64xf32> to vector<16x64xf32>
    %164 = arith.addf %160, %163 : vector<16x64xf32>
    %cst_73 = arith.constant 5.000000e-01 : f32
    %165 = vector.broadcast %cst_73 : f32 to vector<16x64xf32>
    %166 = arith.mulf %164, %165 : vector<16x64xf32>
    %cst_74 = arith.constant 1.41421354 : f32
    %167 = vector.broadcast %cst_74 : f32 to vector<16x64xf32>
    %168 = arith.divf %164, %167 : vector<16x64xf32>
    %169 = math.erf %168 : vector<16x64xf32>
    %cst_75 = arith.constant 1.000000e+00 : f32
    %170 = vector.broadcast %cst_75 : f32 to vector<16x64xf32>
    %171 = arith.addf %170, %169 : vector<16x64xf32>
    %172 = arith.mulf %166, %171 : vector<16x64xf32>
    %c0_76 = arith.constant 0 : index
    %c0_77 = arith.constant 0 : index
    %c0_78 = arith.constant 0 : index
    %173 = vector.load %arg15[%c0_76, %c0_77, %c0_78] : memref<2x64x32xf32, #tpu.memory_space<vmem>>, vector<1x64x32xf32>
    %174 = vector.shape_cast %173 : vector<1x64x32xf32> to vector<64x32xf32>
    %cst_79 = arith.constant dense<0.000000e+00> : vector<16x32xf32>
    %175 = tpu.matmul %172, %174, %cst_79 {dimension_numbers = #tpu.dot_dimension_numbers<[1], [0], [0], [1], [0, 0, 1, 1], [], []>} : vector<16x64xf32>, vector<64x32xf32>, vector<16x32xf32> -> vector<16x32xf32>
    %c0_80 = arith.constant 0 : index
    %c0_81 = arith.constant 0 : index
    %c0_82 = arith.constant 0 : index
    %176 = vector.load %arg16[%c0_80, %c0_81, %c0_82] : memref<2x1x32xf32, #tpu.memory_space<vmem>>, vector<1x1x32xf32>
    %177 = vector.shape_cast %176 : vector<1x1x32xf32> to vector<1x32xf32>
    %178 = vector.broadcast %177 : vector<1x32xf32> to vector<16x32xf32>
    %179 = arith.addf %175, %178 : vector<16x32xf32>
    %180 = arith.addf %179, %157 : vector<16x32xf32>
    %c0_83 = arith.constant 0 : index
    %c0_84 = arith.constant 0 : index
    %c0_85 = arith.constant 0 : index
    %181 = vector.load %arg17[%c0_83, %c0_84, %c0_85] : memref<2x1x32xf32, #tpu.memory_space<vmem>>, vector<1x1x32xf32>
    %182 = vector.shape_cast %181 : vector<1x1x32xf32> to vector<1x32xf32>
    %c0_86 = arith.constant 0 : index
    %c0_87 = arith.constant 0 : index
    %c0_88 = arith.constant 0 : index
    %183 = vector.load %arg18[%c0_86, %c0_87, %c0_88] : memref<2x1x32xf32, #tpu.memory_space<vmem>>, vector<1x1x32xf32>
    %184 = vector.shape_cast %183 : vector<1x1x32xf32> to vector<1x32xf32>
    %cst_89 = arith.constant dense<0.000000e+00> : vector<16xf32>
    %185 = vector.multi_reduction <add>, %180, %cst_89 [1] : vector<16x32xf32> to vector<16xf32>
    %186 = vector.shape_cast %185 : vector<16xf32> to vector<16x1xf32>
    %cst_90 = arith.constant 3.200000e+01 : f32
    %187 = vector.broadcast %cst_90 : f32 to vector<16x1xf32>
    %188 = arith.divf %186, %187 : vector<16x1xf32>
    %189 = vector.broadcast %188 : vector<16x1xf32> to vector<16x32xf32>
    %190 = arith.subf %180, %189 : vector<16x32xf32>
    %191 = arith.mulf %190, %190 : vector<16x32xf32>
    %cst_91 = arith.constant dense<0.000000e+00> : vector<16xf32>
    %192 = vector.multi_reduction <add>, %191, %cst_91 [1] : vector<16x32xf32> to vector<16xf32>
    %193 = vector.shape_cast %192 : vector<16xf32> to vector<16x1xf32>
    %cst_92 = arith.constant 3.200000e+01 : f32
    %194 = vector.broadcast %cst_92 : f32 to vector<16x1xf32>
    %195 = arith.divf %193, %194 : vector<16x1xf32>
    %196 = vector.broadcast %188 : vector<16x1xf32> to vector<16x32xf32>
    %197 = arith.subf %180, %196 : vector<16x32xf32>
    %cst_93 = arith.constant 9.99999996E-13 : f32
    %198 = vector.broadcast %cst_93 : f32 to vector<16x1xf32>
    %199 = arith.addf %195, %198 : vector<16x1xf32>
    %200 = math.rsqrt %199 : vector<16x1xf32>
    %201 = vector.broadcast %200 : vector<16x1xf32> to vector<16x32xf32>
    %202 = arith.mulf %197, %201 : vector<16x32xf32>
    %203 = vector.broadcast %182 : vector<1x32xf32> to vector<16x32xf32>
    %204 = arith.mulf %203, %202 : vector<16x32xf32>
    %205 = vector.broadcast %184 : vector<1x32xf32> to vector<16x32xf32>
    %206 = arith.addf %204, %205 : vector<16x32xf32>
    %c0_94 = arith.constant 0 : index
    %c0_95 = arith.constant 0 : index
    %c0_96 = arith.constant 0 : index
    %207 = vector.load %arg21[%c0_94, %c0_95, %c0_96] : memref<2x16x32xf32, #tpu.memory_space<vmem>>, vector<1x16x32xf32>
    %208 = vector.shape_cast %207 : vector<1x16x32xf32> to vector<16x32xf32>
    %209 = vector.shape_cast %206 : vector<16x32xf32> to vector<1x16x32xf32>
    tpu.vector_store %arg21[%c0_94, %c0_95, %c0_96], %209 {strides = array<i32>} : memref<2x16x32xf32, #tpu.memory_space<vmem>>, vector<1x16x32xf32>,
    %c1 = arith.constant 1 : index
    %c0_97 = arith.constant 0 : index
    %c0_98 = arith.constant 0 : index
    %210 = vector.load %arg7[%c1, %c0_97, %c0_98] : memref<2x32x96xf32, #tpu.memory_space<vmem>>, vector<1x32x96xf32>
    %211 = vector.shape_cast %210 : vector<1x32x96xf32> to vector<32x96xf32>
    %cst_99 = arith.constant dense<0.000000e+00> : vector<16x96xf32>
    %212 = tpu.matmul %206, %211, %cst_99 {dimension_numbers = #tpu.dot_dimension_numbers<[1], [0], [0], [1], [0, 0, 1, 1], [], []>} : vector<16x32xf32>, vector<32x96xf32>, vector<16x96xf32> -> vector<16x96xf32>
    %c1_100 = arith.constant 1 : index
    %c0_101 = arith.constant 0 : index
    %c0_102 = arith.constant 0 : index
    %213 = vector.load %arg8[%c1_100, %c0_101, %c0_102] : memref<2x1x96xf32, #tpu.memory_space<vmem>>, vector<1x1x96xf32>
    %214 = vector.shape_cast %213 : vector<1x1x96xf32> to vector<1x96xf32>
    %215 = vector.broadcast %214 : vector<1x96xf32> to vector<16x96xf32>
    %216 = arith.addf %212, %215 : vector<16x96xf32>
    %217 = vector.extract_strided_slice %216 {offsets = [0, 0], sizes = [16, 32], strides = [1, 1]} : vector<16x96xf32> to vector<16x32xf32>
    %218 = vector.extract_strided_slice %216 {offsets = [0, 32], sizes = [16, 32], strides = [1, 1]} : vector<16x96xf32> to vector<16x32xf32>
    %219 = vector.extract_strided_slice %216 {offsets = [0, 64], sizes = [16, 32], strides = [1, 1]} : vector<16x96xf32> to vector<16x32xf32>
    %220 = vector.extract_strided_slice %217 {offsets = [0, 0], sizes = [16, 8], strides = [1, 1]} : vector<16x32xf32> to vector<16x8xf32>
    %221 = vector.extract_strided_slice %218 {offsets = [0, 0], sizes = [16, 8], strides = [1, 1]} : vector<16x32xf32> to vector<16x8xf32>
    %222 = vector.extract_strided_slice %219 {offsets = [0, 0], sizes = [16, 8], strides = [1, 1]} : vector<16x32xf32> to vector<16x8xf32>
    %cst_103 = arith.constant dense<0.000000e+00> : vector<16x16xf32>
    %223 = tpu.matmul %220, %221, %cst_103 {dimension_numbers = #tpu.dot_dimension_numbers<[1], [1], [0], [0], [0, 0, 1, 0], [], []>} : vector<16x8xf32>, vector<16x8xf32>, vector<16x16xf32> -> vector<16x16xf32>
    %224 = arith.addf %223, %44 : vector<16x16xf32>
    %cst_104 = arith.constant dense<0xFF800000> : vector<16xf32>
    %225 = vector.multi_reduction <maximumf>, %224, %cst_104 [1] : vector<16x16xf32> to vector<16xf32>
    %226 = vector.shape_cast %225 : vector<16xf32> to vector<16x1xf32>
    %227 = vector.broadcast %226 : vector<16x1xf32> to vector<16x16xf32>
    %228 = arith.subf %224, %227 : vector<16x16xf32>
    %229 = math.exp %228 : vector<16x16xf32>
    %cst_105 = arith.constant dense<0.000000e+00> : vector<16xf32>
    %230 = vector.multi_reduction <add>, %229, %cst_105 [1] : vector<16x16xf32> to vector<16xf32>
    %231 = vector.shape_cast %230 : vector<16xf32> to vector<16x1xf32>
    %232 = tpu.reciprocal %231 {approx = true} : vector<16x1xf32> -> vector<16x1xf32>
    %233 = vector.broadcast %232 : vector<16x1xf32> to vector<16x16xf32>
    %234 = arith.mulf %229, %233 : vector<16x16xf32>
    %cst_106 = arith.constant dense<0.000000e+00> : vector<16x8xf32>
    %235 = tpu.matmul %234, %222, %cst_106 {dimension_numbers = #tpu.dot_dimension_numbers<[1], [0], [0], [1], [0, 0, 1, 1], [], []>} : vector<16x16xf32>, vector<16x8xf32>, vector<16x8xf32> -> vector<16x8xf32>
    %c0_107 = arith.constant 0 : index
    %c0_108 = arith.constant 0 : index
    %236 = vector.load %arg23[%c0_107, %c0_108] : memref<16x32xf32, #tpu.memory_space<vmem>>, vector<16x8xf32>
    tpu.vector_store %arg23[%c0_107, %c0_108], %235 {strides = array<i32>} : memref<16x32xf32, #tpu.memory_space<vmem>>, vector<16x8xf32>,
    %237 = vector.extract_strided_slice %217 {offsets = [0, 8], sizes = [16, 8], strides = [1, 1]} : vector<16x32xf32> to vector<16x8xf32>
    %238 = vector.extract_strided_slice %218 {offsets = [0, 8], sizes = [16, 8], strides = [1, 1]} : vector<16x32xf32> to vector<16x8xf32>
    %239 = vector.extract_strided_slice %219 {offsets = [0, 8], sizes = [16, 8], strides = [1, 1]} : vector<16x32xf32> to vector<16x8xf32>
    %cst_109 = arith.constant dense<0.000000e+00> : vector<16x16xf32>
    %240 = tpu.matmul %237, %238, %cst_109 {dimension_numbers = #tpu.dot_dimension_numbers<[1], [1], [0], [0], [0, 0, 1, 0], [], []>} : vector<16x8xf32>, vector<16x8xf32>, vector<16x16xf32> -> vector<16x16xf32>
    %241 = arith.addf %240, %44 : vector<16x16xf32>
    %cst_110 = arith.constant dense<0xFF800000> : vector<16xf32>
    %242 = vector.multi_reduction <maximumf>, %241, %cst_110 [1] : vector<16x16xf32> to vector<16xf32>
    %243 = vector.shape_cast %242 : vector<16xf32> to vector<16x1xf32>
    %244 = vector.broadcast %243 : vector<16x1xf32> to vector<16x16xf32>
    %245 = arith.subf %241, %244 : vector<16x16xf32>
    %246 = math.exp %245 : vector<16x16xf32>
    %cst_111 = arith.constant dense<0.000000e+00> : vector<16xf32>
    %247 = vector.multi_reduction <add>, %246, %cst_111 [1] : vector<16x16xf32> to vector<16xf32>
    %248 = vector.shape_cast %247 : vector<16xf32> to vector<16x1xf32>
    %249 = tpu.reciprocal %248 {approx = true} : vector<16x1xf32> -> vector<16x1xf32>
    %250 = vector.broadcast %249 : vector<16x1xf32> to vector<16x16xf32>
    %251 = arith.mulf %246, %250 : vector<16x16xf32>
    %cst_112 = arith.constant dense<0.000000e+00> : vector<16x8xf32>
    %252 = tpu.matmul %251, %239, %cst_112 {dimension_numbers = #tpu.dot_dimension_numbers<[1], [0], [0], [1], [0, 0, 1, 1], [], []>} : vector<16x16xf32>, vector<16x8xf32>, vector<16x8xf32> -> vector<16x8xf32>
    %c0_113 = arith.constant 0 : index
    %c8_114 = arith.constant 8 : index
    %253 = vector.load %arg23[%c0_113, %c8_114] : memref<16x32xf32, #tpu.memory_space<vmem>>, vector<16x8xf32>
    tpu.vector_store %arg23[%c0_113, %c8_114], %252 {strides = array<i32>} : memref<16x32xf32, #tpu.memory_space<vmem>>, vector<16x8xf32>,
    %254 = vector.extract_strided_slice %217 {offsets = [0, 16], sizes = [16, 8], strides = [1, 1]} : vector<16x32xf32> to vector<16x8xf32>
    %255 = vector.extract_strided_slice %218 {offsets = [0, 16], sizes = [16, 8], strides = [1, 1]} : vector<16x32xf32> to vector<16x8xf32>
    %256 = vector.extract_strided_slice %219 {offsets = [0, 16], sizes = [16, 8], strides = [1, 1]} : vector<16x32xf32> to vector<16x8xf32>
    %cst_115 = arith.constant dense<0.000000e+00> : vector<16x16xf32>
    %257 = tpu.matmul %254, %255, %cst_115 {dimension_numbers = #tpu.dot_dimension_numbers<[1], [1], [0], [0], [0, 0, 1, 0], [], []>} : vector<16x8xf32>, vector<16x8xf32>, vector<16x16xf32> -> vector<16x16xf32>
    %258 = arith.addf %257, %44 : vector<16x16xf32>
    %cst_116 = arith.constant dense<0xFF800000> : vector<16xf32>
    %259 = vector.multi_reduction <maximumf>, %258, %cst_116 [1] : vector<16x16xf32> to vector<16xf32>
    %260 = vector.shape_cast %259 : vector<16xf32> to vector<16x1xf32>
    %261 = vector.broadcast %260 : vector<16x1xf32> to vector<16x16xf32>
    %262 = arith.subf %258, %261 : vector<16x16xf32>
    %263 = math.exp %262 : vector<16x16xf32>
    %cst_117 = arith.constant dense<0.000000e+00> : vector<16xf32>
    %264 = vector.multi_reduction <add>, %263, %cst_117 [1] : vector<16x16xf32> to vector<16xf32>
    %265 = vector.shape_cast %264 : vector<16xf32> to vector<16x1xf32>
    %266 = tpu.reciprocal %265 {approx = true} : vector<16x1xf32> -> vector<16x1xf32>
    %267 = vector.broadcast %266 : vector<16x1xf32> to vector<16x16xf32>
    %268 = arith.mulf %263, %267 : vector<16x16xf32>
    %cst_118 = arith.constant dense<0.000000e+00> : vector<16x8xf32>
    %269 = tpu.matmul %268, %256, %cst_118 {dimension_numbers = #tpu.dot_dimension_numbers<[1], [0], [0], [1], [0, 0, 1, 1], [], []>} : vector<16x16xf32>, vector<16x8xf32>, vector<16x8xf32> -> vector<16x8xf32>
    %c0_119 = arith.constant 0 : index
    %c16_120 = arith.constant 16 : index
    %270 = vector.load %arg23[%c0_119, %c16_120] : memref<16x32xf32, #tpu.memory_space<vmem>>, vector<16x8xf32>
    tpu.vector_store %arg23[%c0_119, %c16_120], %269 {strides = array<i32>} : memref<16x32xf32, #tpu.memory_space<vmem>>, vector<16x8xf32>,
    %271 = vector.extract_strided_slice %217 {offsets = [0, 24], sizes = [16, 8], strides = [1, 1]} : vector<16x32xf32> to vector<16x8xf32>
    %272 = vector.extract_strided_slice %218 {offsets = [0, 24], sizes = [16, 8], strides = [1, 1]} : vector<16x32xf32> to vector<16x8xf32>
    %273 = vector.extract_strided_slice %219 {offsets = [0, 24], sizes = [16, 8], strides = [1, 1]} : vector<16x32xf32> to vector<16x8xf32>
    %cst_121 = arith.constant dense<0.000000e+00> : vector<16x16xf32>
    %274 = tpu.matmul %271, %272, %cst_121 {dimension_numbers = #tpu.dot_dimension_numbers<[1], [1], [0], [0], [0, 0, 1, 0], [], []>} : vector<16x8xf32>, vector<16x8xf32>, vector<16x16xf32> -> vector<16x16xf32>
    %275 = arith.addf %274, %44 : vector<16x16xf32>
    %cst_122 = arith.constant dense<0xFF800000> : vector<16xf32>
    %276 = vector.multi_reduction <maximumf>, %275, %cst_122 [1] : vector<16x16xf32> to vector<16xf32>
    %277 = vector.shape_cast %276 : vector<16xf32> to vector<16x1xf32>
    %278 = vector.broadcast %277 : vector<16x1xf32> to vector<16x16xf32>
    %279 = arith.subf %275, %278 : vector<16x16xf32>
    %280 = math.exp %279 : vector<16x16xf32>
    %cst_123 = arith.constant dense<0.000000e+00> : vector<16xf32>
    %281 = vector.multi_reduction <add>, %280, %cst_123 [1] : vector<16x16xf32> to vector<16xf32>
    %282 = vector.shape_cast %281 : vector<16xf32> to vector<16x1xf32>
    %283 = tpu.reciprocal %282 {approx = true} : vector<16x1xf32> -> vector<16x1xf32>
    %284 = vector.broadcast %283 : vector<16x1xf32> to vector<16x16xf32>
    %285 = arith.mulf %280, %284 : vector<16x16xf32>
    %cst_124 = arith.constant dense<0.000000e+00> : vector<16x8xf32>
    %286 = tpu.matmul %285, %273, %cst_124 {dimension_numbers = #tpu.dot_dimension_numbers<[1], [0], [0], [1], [0, 0, 1, 1], [], []>} : vector<16x16xf32>, vector<16x8xf32>, vector<16x8xf32> -> vector<16x8xf32>
    %c0_125 = arith.constant 0 : index
    %c24_126 = arith.constant 24 : index
    %287 = vector.load %arg23[%c0_125, %c24_126] : memref<16x32xf32, #tpu.memory_space<vmem>>, vector<16x8xf32>
    tpu.vector_store %arg23[%c0_125, %c24_126], %286 {strides = array<i32>} : memref<16x32xf32, #tpu.memory_space<vmem>>, vector<16x8xf32>,
    %c0_127 = arith.constant 0 : index
    %c0_128 = arith.constant 0 : index
    %288 = vector.load %arg23[%c0_127, %c0_128] : memref<16x32xf32, #tpu.memory_space<vmem>>, vector<16x32xf32>
    %c1_129 = arith.constant 1 : index
    %c0_130 = arith.constant 0 : index
    %c0_131 = arith.constant 0 : index
    %289 = vector.load %arg9[%c1_129, %c0_130, %c0_131] : memref<2x32x32xf32, #tpu.memory_space<vmem>>, vector<1x32x32xf32>
    %290 = vector.shape_cast %289 : vector<1x32x32xf32> to vector<32x32xf32>
    %cst_132 = arith.constant dense<0.000000e+00> : vector<16x32xf32>
    %291 = tpu.matmul %288, %290, %cst_132 {dimension_numbers = #tpu.dot_dimension_numbers<[1], [0], [0], [1], [0, 0, 1, 1], [], []>} : vector<16x32xf32>, vector<32x32xf32>, vector<16x32xf32> -> vector<16x32xf32>
    %c1_133 = arith.constant 1 : index
    %c0_134 = arith.constant 0 : index
    %c0_135 = arith.constant 0 : index
    %292 = vector.load %arg10[%c1_133, %c0_134, %c0_135] : memref<2x1x32xf32, #tpu.memory_space<vmem>>, vector<1x1x32xf32>
    %293 = vector.shape_cast %292 : vector<1x1x32xf32> to vector<1x32xf32>
    %294 = vector.broadcast %293 : vector<1x32xf32> to vector<16x32xf32>
    %295 = arith.addf %291, %294 : vector<16x32xf32>
    %296 = arith.addf %295, %206 : vector<16x32xf32>
    %c1_136 = arith.constant 1 : index
    %c0_137 = arith.constant 0 : index
    %c0_138 = arith.constant 0 : index
    %297 = vector.load %arg11[%c1_136, %c0_137, %c0_138] : memref<2x1x32xf32, #tpu.memory_space<vmem>>, vector<1x1x32xf32>
    %298 = vector.shape_cast %297 : vector<1x1x32xf32> to vector<1x32xf32>
    %c1_139 = arith.constant 1 : index
    %c0_140 = arith.constant 0 : index
    %c0_141 = arith.constant 0 : index
    %299 = vector.load %arg12[%c1_139, %c0_140, %c0_141] : memref<2x1x32xf32, #tpu.memory_space<vmem>>, vector<1x1x32xf32>
    %300 = vector.shape_cast %299 : vector<1x1x32xf32> to vector<1x32xf32>
    %cst_142 = arith.constant dense<0.000000e+00> : vector<16xf32>
    %301 = vector.multi_reduction <add>, %296, %cst_142 [1] : vector<16x32xf32> to vector<16xf32>
    %302 = vector.shape_cast %301 : vector<16xf32> to vector<16x1xf32>
    %cst_143 = arith.constant 3.200000e+01 : f32
    %303 = vector.broadcast %cst_143 : f32 to vector<16x1xf32>
    %304 = arith.divf %302, %303 : vector<16x1xf32>
    %305 = vector.broadcast %304 : vector<16x1xf32> to vector<16x32xf32>
    %306 = arith.subf %296, %305 : vector<16x32xf32>
    %307 = arith.mulf %306, %306 : vector<16x32xf32>
    %cst_144 = arith.constant dense<0.000000e+00> : vector<16xf32>
    %308 = vector.multi_reduction <add>, %307, %cst_144 [1] : vector<16x32xf32> to vector<16xf32>
    %309 = vector.shape_cast %308 : vector<16xf32> to vector<16x1xf32>
    %cst_145 = arith.constant 3.200000e+01 : f32
    %310 = vector.broadcast %cst_145 : f32 to vector<16x1xf32>
    %311 = arith.divf %309, %310 : vector<16x1xf32>
    %312 = vector.broadcast %304 : vector<16x1xf32> to vector<16x32xf32>
    %313 = arith.subf %296, %312 : vector<16x32xf32>
    %cst_146 = arith.constant 9.99999996E-13 : f32
    %314 = vector.broadcast %cst_146 : f32 to vector<16x1xf32>
    %315 = arith.addf %311, %314 : vector<16x1xf32>
    %316 = math.rsqrt %315 : vector<16x1xf32>
    %317 = vector.broadcast %316 : vector<16x1xf32> to vector<16x32xf32>
    %318 = arith.mulf %313, %317 : vector<16x32xf32>
    %319 = vector.broadcast %298 : vector<1x32xf32> to vector<16x32xf32>
    %320 = arith.mulf %319, %318 : vector<16x32xf32>
    %321 = vector.broadcast %300 : vector<1x32xf32> to vector<16x32xf32>
    %322 = arith.addf %320, %321 : vector<16x32xf32>
    %c1_147 = arith.constant 1 : index
    %c0_148 = arith.constant 0 : index
    %c0_149 = arith.constant 0 : index
    %323 = vector.load %arg13[%c1_147, %c0_148, %c0_149] : memref<2x32x64xf32, #tpu.memory_space<vmem>>, vector<1x32x64xf32>
    %324 = vector.shape_cast %323 : vector<1x32x64xf32> to vector<32x64xf32>
    %cst_150 = arith.constant dense<0.000000e+00> : vector<16x64xf32>
    %325 = tpu.matmul %322, %324, %cst_150 {dimension_numbers = #tpu.dot_dimension_numbers<[1], [0], [0], [1], [0, 0, 1, 1], [], []>} : vector<16x32xf32>, vector<32x64xf32>, vector<16x64xf32> -> vector<16x64xf32>
    %c1_151 = arith.constant 1 : index
    %c0_152 = arith.constant 0 : index
    %c0_153 = arith.constant 0 : index
    %326 = vector.load %arg14[%c1_151, %c0_152, %c0_153] : memref<2x1x64xf32, #tpu.memory_space<vmem>>, vector<1x1x64xf32>
    %327 = vector.shape_cast %326 : vector<1x1x64xf32> to vector<1x64xf32>
    %328 = vector.broadcast %327 : vector<1x64xf32> to vector<16x64xf32>
    %329 = arith.addf %325, %328 : vector<16x64xf32>
    %cst_154 = arith.constant 5.000000e-01 : f32
    %330 = vector.broadcast %cst_154 : f32 to vector<16x64xf32>
    %331 = arith.mulf %329, %330 : vector<16x64xf32>
    %cst_155 = arith.constant 1.41421354 : f32
    %332 = vector.broadcast %cst_155 : f32 to vector<16x64xf32>
    %333 = arith.divf %329, %332 : vector<16x64xf32>
    %334 = math.erf %333 : vector<16x64xf32>
    %cst_156 = arith.constant 1.000000e+00 : f32
    %335 = vector.broadcast %cst_156 : f32 to vector<16x64xf32>
    %336 = arith.addf %335, %334 : vector<16x64xf32>
    %337 = arith.mulf %331, %336 : vector<16x64xf32>
    %c1_157 = arith.constant 1 : index
    %c0_158 = arith.constant 0 : index
    %c0_159 = arith.constant 0 : index
    %338 = vector.load %arg15[%c1_157, %c0_158, %c0_159] : memref<2x64x32xf32, #tpu.memory_space<vmem>>, vector<1x64x32xf32>
    %339 = vector.shape_cast %338 : vector<1x64x32xf32> to vector<64x32xf32>
    %cst_160 = arith.constant dense<0.000000e+00> : vector<16x32xf32>
    %340 = tpu.matmul %337, %339, %cst_160 {dimension_numbers = #tpu.dot_dimension_numbers<[1], [0], [0], [1], [0, 0, 1, 1], [], []>} : vector<16x64xf32>, vector<64x32xf32>, vector<16x32xf32> -> vector<16x32xf32>
    %c1_161 = arith.constant 1 : index
    %c0_162 = arith.constant 0 : index
    %c0_163 = arith.constant 0 : index
    %341 = vector.load %arg16[%c1_161, %c0_162, %c0_163] : memref<2x1x32xf32, #tpu.memory_space<vmem>>, vector<1x1x32xf32>
    %342 = vector.shape_cast %341 : vector<1x1x32xf32> to vector<1x32xf32>
    %343 = vector.broadcast %342 : vector<1x32xf32> to vector<16x32xf32>
    %344 = arith.addf %340, %343 : vector<16x32xf32>
    %345 = arith.addf %344, %322 : vector<16x32xf32>
    %c1_164 = arith.constant 1 : index
    %c0_165 = arith.constant 0 : index
    %c0_166 = arith.constant 0 : index
    %346 = vector.load %arg17[%c1_164, %c0_165, %c0_166] : memref<2x1x32xf32, #tpu.memory_space<vmem>>, vector<1x1x32xf32>
    %347 = vector.shape_cast %346 : vector<1x1x32xf32> to vector<1x32xf32>
    %c1_167 = arith.constant 1 : index
    %c0_168 = arith.constant 0 : index
    %c0_169 = arith.constant 0 : index
    %348 = vector.load %arg18[%c1_167, %c0_168, %c0_169] : memref<2x1x32xf32, #tpu.memory_space<vmem>>, vector<1x1x32xf32>
    %349 = vector.shape_cast %348 : vector<1x1x32xf32> to vector<1x32xf32>
    %cst_170 = arith.constant dense<0.000000e+00> : vector<16xf32>
    %350 = vector.multi_reduction <add>, %345, %cst_170 [1] : vector<16x32xf32> to vector<16xf32>
    %351 = vector.shape_cast %350 : vector<16xf32> to vector<16x1xf32>
    %cst_171 = arith.constant 3.200000e+01 : f32
    %352 = vector.broadcast %cst_171 : f32 to vector<16x1xf32>
    %353 = arith.divf %351, %352 : vector<16x1xf32>
    %354 = vector.broadcast %353 : vector<16x1xf32> to vector<16x32xf32>
    %355 = arith.subf %345, %354 : vector<16x32xf32>
    %356 = arith.mulf %355, %355 : vector<16x32xf32>
    %cst_172 = arith.constant dense<0.000000e+00> : vector<16xf32>
    %357 = vector.multi_reduction <add>, %356, %cst_172 [1] : vector<16x32xf32> to vector<16xf32>
    %358 = vector.shape_cast %357 : vector<16xf32> to vector<16x1xf32>
    %cst_173 = arith.constant 3.200000e+01 : f32
    %359 = vector.broadcast %cst_173 : f32 to vector<16x1xf32>
    %360 = arith.divf %358, %359 : vector<16x1xf32>
    %361 = vector.broadcast %353 : vector<16x1xf32> to vector<16x32xf32>
    %362 = arith.subf %345, %361 : vector<16x32xf32>
    %cst_174 = arith.constant 9.99999996E-13 : f32
    %363 = vector.broadcast %cst_174 : f32 to vector<16x1xf32>
    %364 = arith.addf %360, %363 : vector<16x1xf32>
    %365 = math.rsqrt %364 : vector<16x1xf32>
    %366 = vector.broadcast %365 : vector<16x1xf32> to vector<16x32xf32>
    %367 = arith.mulf %362, %366 : vector<16x32xf32>
    %368 = vector.broadcast %347 : vector<1x32xf32> to vector<16x32xf32>
    %369 = arith.mulf %368, %367 : vector<16x32xf32>
    %370 = vector.broadcast %349 : vector<1x32xf32> to vector<16x32xf32>
    %371 = arith.addf %369, %370 : vector<16x32xf32>
    %c1_175 = arith.constant 1 : index
    %c0_176 = arith.constant 0 : index
    %c0_177 = arith.constant 0 : index
    %372 = vector.load %arg21[%c1_175, %c0_176, %c0_177] : memref<2x16x32xf32, #tpu.memory_space<vmem>>, vector<1x16x32xf32>
    %373 = vector.shape_cast %372 : vector<1x16x32xf32> to vector<16x32xf32>
    %374 = vector.shape_cast %371 : vector<16x32xf32> to vector<1x16x32xf32>
    tpu.vector_store %arg21[%c1_175, %c0_176, %c0_177], %374 {strides = array<i32>} : memref<2x16x32xf32, #tpu.memory_space<vmem>>, vector<1x16x32xf32>,
    %375 = tpu.iota {dimensions = array<i32: 1>} : vector<2x16xi32>
    %376 = tpu.iota {dimensions = array<i32: 0>} : vector<2x16xi32>
    %c8_i32 = arith.constant 8 : i32
    %377 = vector.broadcast %c8_i32 : i32 to vector<2x16xi32>
    %378 = arith.muli %377, %376 : vector<2x16xi32>
    %379 = arith.cmpi eq, %375, %378 : vector<2x16xi32>
    %380 = arith.extui %379 : vector<2x16xi1> to vector<2x16xi32>
    %381 = arith.sitofp %380 : vector<2x16xi32> to vector<2x16xf32>
    %cst_178 = arith.constant dense<0.000000e+00> : vector<2x32xf32>
    %382 = tpu.matmul %381, %371, %cst_178 {dimension_numbers = #tpu.dot_dimension_numbers<[1], [0], [0], [1], [0, 0, 1, 1], [], []>} : vector<2x16xf32>, vector<16x32xf32>, vector<2x32xf32> -> vector<2x32xf32>
    %c0_179 = arith.constant 0 : index
    %c0_180 = arith.constant 0 : index
    %383 = vector.load %arg19[%c0_179, %c0_180] : memref<32x32xf32, #tpu.memory_space<vmem>>, vector<32x32xf32>
    %cst_181 = arith.constant dense<0.000000e+00> : vector<2x32xf32>
    %384 = tpu.matmul %382, %383, %cst_181 {dimension_numbers = #tpu.dot_dimension_numbers<[1], [0], [0], [1], [0, 0, 1, 1], [], []>} : vector<2x32xf32>, vector<32x32xf32>, vector<2x32xf32> -> vector<2x32xf32>
    %c0_182 = arith.constant 0 : index
    %c0_183 = arith.constant 0 : index
    %385 = vector.load %arg20[%c0_182, %c0_183] : memref<1x32xf32, #tpu.memory_space<vmem>>, vector<1x32xf32>
    %386 = vector.broadcast %385 : vector<1x32xf32> to vector<2x32xf32>
    %387 = arith.addf %384, %386 : vector<2x32xf32>
    %388 = math.tanh %387 : vector<2x32xf32>
    %c0_184 = arith.constant 0 : index
    %c0_185 = arith.constant 0 : index
    %389 = vector.load %arg22[%c0_184, %c0_185] : memref<2x32xf32, #tpu.memory_space<vmem>>, vector<2x32xf32>
    tpu.vector_store %arg22[%c0_184, %c0_185], %388 {strides = array<i32>} : memref<2x32xf32, #tpu.memory_space<vmem>>, vector<2x32xf32>,
    return
  }
}

</mosaic_0001>

<bundles_post_ra>
// kernel: tpu_custom_call.1
= control target key start
LH: loop header
LB: loop body
LE: loop exit
PB: predicated region body
PF: predicated region fallthrough
CT: control target
= control target key end

     0   :  { %s4869_s0 = inlined_call_operand.vmem [shape: s32[16,1], index: 0, kind: input, shape index: {}]   ;;  %s4870_s1 = inlined_call_operand.vmem [shape: s32[16,1], index: 1, kind: input, shape index: {}]   ;;  %s4871_s2 = inlined_call_operand.vmem [shape: s32[16,1], index: 2, kind: input, shape index: {}]   ;;  %s4872_s3 = inlined_call_operand.hbm [shape: f32[16,16], index: 3, kind: input, shape index: {}]   ;;  %s4873_s4 = inlined_call_operand.vmem [shape: f32[26,32], index: 4, kind: input, shape index: {}]   ;;  %s4874_s5 = inlined_call_operand.vmem [shape: f32[1,32], index: 5, kind: input, shape index: {}]   ;;  %s4875_s6 = inlined_call_operand.hbm [shape: f32[1,32], index: 6, kind: input, shape index: {}]   ;;  %s4876_s7 = inlined_call_operand.vmem [shape: f32[2,32,96], index: 7, kind: input, shape index: {}]   ;;  %s4877_s8 = inlined_call_operand.vmem [shape: f32[2,1,96], index: 8, kind: input, shape index: {}]   ;;  %s4878_s9 = inlined_call_operand.vmem [shape: f32[2,32,32], index: 9, kind: input, shape index: {}]   ;;  %s4879_s10 = inlined_call_operand.vmem [shape: f32[2,1,32], index: 10, kind: input, shape index: {}]   ;;  %s4880_s11 = inlined_call_operand.vmem [shape: f32[2,1,32], index: 11, kind: input, shape index: {}]   ;;  %s4881_s12 = inlined_call_operand.vmem [shape: f32[2,1,32], index: 12, kind: input, shape index: {}]   ;;  %s4882_s13 = inlined_call_operand.vmem [shape: f32[2,32,64], index: 13, kind: input, shape index: {}]   ;;  %s4883_s14 = inlined_call_operand.vmem [shape: f32[2,1,64], index: 14, kind: input, shape index: {}]   ;;  %s4884_s15 = inlined_call_operand.vmem [shape: f32[2,64,32], index: 15, kind: input, shape index: {}]   ;;  %s4885_s16 = inlined_call_operand.vmem [shape: f32[2,1,32], index: 16, kind: input, shape index: {}]   ;;  %s4886_s17 = inlined_call_operand.vmem [shape: f32[2,1,32], index: 17, kind: input, shape index: {}]   ;;  %s4887_s18 = inlined_call_operand.vmem [shape: f32[2,1,32], index: 18, kind: input, shape index: {}]   ;;  %s4888_s19 = inlined_call_operand.hbm [shape: f32[32,32], index: 19, kind: input, shape index: {}]   ;;  %s4889_s20 = inlined_call_operand.vmem [shape: f32[1,32], index: 20, kind: input, shape index: {}]   ;;  %s4890_s21 = inlined_call_operand.hbm [shape: f32[2,16,32], index: 21, kind: output, shape index: {0}]   ;;  %s4891_s22 = inlined_call_operand.hbm [shape: f32[2,32], index: 22, kind: output, shape index: {1}]  }
   0x1   :  { %4908 = sst [smem:[#allocation16_spill]] %s4869_s0 }
   0x2   :  { %4909 = sst [smem:[#allocation17_spill]] %s4870_s1 }
   0x3   :  { %4910 = sst [smem:[#allocation18_spill]] %s4871_s2 }
   0x4   :  { %4911 = sst [smem:[#allocation19_spill]] %s4872_s3 }
   0x5   :  { %4912 = sst [smem:[#allocation20_spill]] %s4873_s4 }
   0x6   :  { %4913 = sst [smem:[#allocation21_spill]] %s4874_s5 }
   0x7   :  { %4914 = sst [smem:[#allocation22_spill]] %s4875_s6 }
   0x8   :  { %4915 = sst [smem:[#allocation23_spill]] %s4891_s22 }
   0x9   :  { %28 = vsyncpa [#allocation4], 0 }
   0xa   :  { %29 = vsyncpa [#allocation7], 0 }
   0xb   :  { %30 = vsyncpa [#allocation5], 0 }
   0xc   :  { %31 = vsyncpa [#allocation11], 0  ;;  %s4133_s3 = smov [#allocation6]   ;;  %s4134_s29 = smov [#allocation3]  }
   0xd   :  { %s60_s28 = sshll.u32 %s4133_s3, 4  ;;  %s43_s30 = sshll.u32 %s4134_s29, 4  ;;  %s61_s28 = int_to_ptr.vmem [resolvable:$true] %s60_s28  ;;  %s4273_s30 = int_to_ptr.vmem [resolvable:$true] %s43_s30 }
   0xe   :  { %s4916_s23 = sld [smem:[#allocation22_spill]] }
  0x14   :  { %s4015_s1 = scalar_lea.hbm %s4916_s23, 16 }
  0x15   :  { %p4016_p0 = scmp.ne.s32.totalorder %s4916_s23, %s4015_s1  ;;  %p4019_p1 = scmp.lt.u32.totalorder %s4015_s1, %s4916_s23 }
  0x17   :  { %p4021_p2 = pnand %p4019_p1, %p4016_p0 }
  0x19   :  { %4024 = shalt.err (!%p4021_p2)
}
  0x1a   :  { %s4025_s26 = scalar_lea.vmem %s61_s28, 16  ;;  %s4029_s2 = scalar_lea.vmem %s61_s28, 32 }
  0x1b   :  { %p4026_p3 = scmp.ne.s32.totalorder %s61_s28, %s4025_s26  ;;  %p4030_p4 = scmp.lt.s32.totalorder %s61_s28, %s61_s28 }
  0x1c   :  { %p4031_p5 = scmp.lt.s32.totalorder %s4029_s2, %s4025_s26 }
  0x1e   :  { %p4032_p6 = por %p4031_p5, %p4030_p4 }
  0x20   :  { %p4033_p7 = pnand %p4032_p6, %p4026_p3 }
  0x22   :  { %4036 = shalt.err (!%p4033_p7)
}
  0x23   :  { %63 = dma.hbm_to_vmem [thread:$0]  %s4916_s23, 16, %s61_s28, [#allocation7]  }
  0x24   :  { %s4917_s0 = sld [smem:[#allocation19_spill]] }
  0x2a   :  { %s4037_s5 = scalar_lea.hbm %s4917_s0, 256 }
  0x2b   :  { %p4038_p8 = scmp.ne.s32.totalorder %s4917_s0, %s4037_s5  ;;  %p4041_p9 = scmp.lt.u32.totalorder %s4037_s5, %s4917_s0 }
  0x2d   :  { %p4043_p10 = pnand %p4041_p9, %p4038_p8 }
  0x2f   :  { %4046 = shalt.err (!%p4043_p10)
}
  0x30   :  { %s4047_s26 = scalar_lea.vmem %s4273_s30, 256  ;;  %p4052_p12 = scmp.lt.s32.totalorder %s4273_s30, %s4273_s30 }
  0x31   :  { %p4048_p11 = scmp.ne.s32.totalorder %s4273_s30, %s4047_s26  ;;  %p4053_p13 = scmp.lt.s32.totalorder %s4047_s26, %s4047_s26 }
  0x33   :  { %p4054_p0 = por %p4053_p13, %p4052_p12 }
  0x35   :  { %p4055_p1 = pnand %p4054_p0, %p4048_p11 }
  0x37   :  { %4058 = shalt.err (!%p4055_p1)
}
  0x38   :  { %s4899_s28 = smov 128   ;;  %s4903_s23 = smov 8  }
  0x39   :  { %49 = dma.hbm_to_vmem [thread:$0]  %s4917_s0, 256, %s4273_s30, [#allocation4], %s4899_s28, %s4899_s28, %s4903_s23  }
  0x3a   :  { %s4137_s3 = smov [#allocation8]   ;;  %s4059_s24 = scalar_lea.hbm %s4888_s19, 512 }
  0x3b   :  { %s93_s29 = sshll.u32 %s4137_s3, 4  ;;  %p4060_p2 = scmp.ne.s32.totalorder %s4888_s19, %s4059_s24  ;;  %s94_s29 = int_to_ptr.vmem [resolvable:$true] %s93_s29 }
  0x3c   :  { %p4063_p3 = scmp.lt.u32.totalorder %s4059_s24, %s4888_s19 }
  0x3e   :  { %p4065_p4 = pnand %p4063_p3, %p4060_p2 }
  0x40   :  { %4068 = shalt.err (!%p4065_p4)
}
  0x41   :  { %s4069_s22 = scalar_lea.vmem %s94_s29, 512  ;;  %p4074_p6 = scmp.lt.s32.totalorder %s94_s29, %s94_s29 }
  0x42   :  { %p4070_p5 = scmp.ne.s32.totalorder %s94_s29, %s4069_s22  ;;  %p4075_p7 = scmp.lt.s32.totalorder %s4069_s22, %s4069_s22 }
  0x44   :  { %p4076_p8 = por %p4075_p7, %p4074_p6 }
  0x46   :  { %p4077_p9 = pnand %p4076_p8, %p4070_p5 }
  0x48   :  { %4080 = shalt.err (!%p4077_p9)
}
  0x49   :  { %99 = dma.hbm_to_vmem [thread:$0]  %s4888_s19, 512, %s94_s29, [#allocation7], %s4899_s28, %s4899_s28, %s4903_s23  }
  0x4a   :  { %4125 = dma.done.wait [#allocation4], 256  }
  0x4b   :  { %4126 = vsyncadd [#allocation4], 4294967040 }
  0x4c   :  { %4127 = dma.done.wait [#allocation7], 528  }
  0x4d   :  { %4128 = vsyncadd [#allocation7], 4294966768  ;;  %v4138_v0 = vmov 0   ;;  %s4918_s22 = sld [smem:[#allocation16_spill]]  ;;  %s4919_s19 = sld [smem:[#allocation17_spill]]  ;;  %vm170_vm0 = vcmask 1041408   ;;  %v111_v13 = vlaneseq }
  0x4e   :  { %3838 = vset.pattern.permute.xlu1 %v4138_v0  ;;  %3837 = vset.pattern.permute.xlu0 %v4138_v0  ;;  %s4920_s26 = sld [smem:[#allocation20_spill]]  ;;  %vm4139_vm1 = vmmov 1   ;;  %v4140_v19 = vmov 0.0   ;;  %vm163_vm9 = vcmask 211968   ;;  %vm251_vm10 = vcmask 261120   ;;  %v297_v46 = vld [vmem:[%s4876_s7] sm:$0xff] }
  0x4f   :  { %vm3638_vm2 = vmpackc.low %vm170_vm0, %vm4139_vm1  ;;  %v4353_v16 = vand.u32 127, %v111_v13  ;;  %v298_v47 = vld [vmem:[%s4876_s7 + $0x8] sm:$0xff]  ;;  %v299_v48 = vld [vmem:[%s4876_s7 + $0x10] sm:$0xff]  ;;  %s4922_s4 = sld [smem:[#allocation21_spill]]  ;;  %vm395_vm11 = vcmask 64512   ;;  %s4142_s29 = smov 64  }
  0x50   :  { %v3643_v49 = vpack.c.bf16 %v298_v47, %v297_v46  ;;  %v300_v50 = vld [vmem:[%s4876_s7 + $0x18] sm:$0xff]  ;;  %v3141_v61 = vld [vmem:[#allocation6] ss:$0 sm:$0xff]  ;;  %s4143_s1 = smov 120   ;;  %vm4417_vm12 = vmpackc.low %vm395_vm11, %vm395_vm11  ;;  %vm479_vm13 = vcmask 130048   ;;  %s4144_s6 = smov 88  }
  0x51   :  { %v3647_v51 = vpack.c.bf16 %v300_v50, %v299_v48  ;;  %s4145_s25 = smov 80   ;;  %s4147_s30 = smov 112   ;;  %vm799_vm14 = vcmask 130112   ;;  %vm1010_vm15 = vcmask 195712   ;;  %vm1221_vm0 = vcmask 261312  }
  0x52   :  { %3644 = vmatprep.subr.bf16.mxu1 %v3643_v49  ;;  %s4148_s0 = smov 72   ;;  %s4149_s2 = smov 104   ;;  %vm1482_vm1 = vcmask 523264  }
  0x53   :  { %v114_v1 = vld [vmem:[%s4918_s22 + $0x8] sm:$0xff]  ;;  %v113_v2 = vld [vmem:[%s4918_s22] sm:$0xff]  ;;  %s4921_s22 = sld [smem:[#allocation18_spill]]  ;;  %3646 = vmatpush3.bf16.msra.mxu1 %v3643_v49  ;;  %s4905_s27 = smov 48  }
  0x54   :  { %119 = vperm.xlu1 %3838, %v114_v1   ;;  %116 = vperm.xlu0 %3837, %v113_v2   ;;  %v128_v3 = vld [vmem:[%s4919_s19 + $0x8] sm:$0xff]  ;;  %v127_v4 = vld [vmem:[%s4919_s19] sm:$0xff]  ;;  %v161_v10 = vld [vmem:[%s4920_s26 + $0x10] sm:$0xff]  ;;  %s4141_s19 = smov 96   ;;  %s4900_s3 = smov 16  }
  0x55   :  { %v159_v5 = vld [vmem:[%s4920_s26] sm:$0xff]  ;;  %v160_v6 = vld [vmem:[%s4920_s26 + $0x8] sm:$0xff]  ;;  %v162_v11 = vld [vmem:[%s4920_s26 + $0x18] sm:$0x3]  ;;  %3648 = vmatprep.subr.bf16.mxu1 %v3647_v51  ;;  %s4146_s26 = smov 56  }
  0x56   :  { %v3633_v7 = vpack.c.bf16 %v160_v6, %v159_v5  ;;  %v3637_v12 = vpack.c.bf16 %v162_v11, %v161_v10  ;;  %v3140_v59 = vld [vmem:[%s4922_s4] ss:$0 sm:$0xff]  ;;  %s4906_s4 = smov 24  }
  0x57   :  { %3650 = vmatpush3.bf16.msra.mxu1 %v3647_v51 }
  0x58   :  { %133 = vperm.xlu1 %3838, %v128_v3   ;;  %130 = vperm.xlu0 %3837, %v127_v4   ;;  %v3142_v4 = vld [vmem:[%s4877_s8] ss:$0 sm:$0xff] }
  0x59   :  { %v144_v8 = vld [vmem:[%s4921_s22 + $0x8] sm:$0xff]  ;;  %v143_v9 = vld [vmem:[%s4921_s22] sm:$0xff]  ;;  %3634 = vmatprep.subr.bf16.mxu0 %v3633_v7  ;;  %s4902_s22 = smov 40  }
  0x5a   :  { %3636 = vmatpush3.bf16.msra.mxu0 %v3633_v7 }
  0x5b   :  { %3639 = vmatprep.subr.msk.bf16.mxu0 %vm3638_vm2, %v3637_v12 }
  0x5c   :  { %149 = vperm.xlu1 %3838, %v144_v8   ;;  %146 = vperm.xlu0 %3837, %v143_v9  }
  0x5e   :  { %3642 = vmatpush3.bf16.msk.msra.mxu0 %vm3638_vm2, %v3637_v12  ;;  %vm4155_vm2 = vmmov 0  }
  0xd3   :  { %v120_v14 = vpop.permute.xlu1 %119  ;;  %v117_v15 = vpop.permute.xlu0 %116 }
  0xd4   :  { %vm122_vm3 = vcmp.eq.s32.totalorder %v4353_v16, %v120_v14  ;;  %vm121_vm4 = vcmp.eq.s32.totalorder %v4353_v16, %v117_v15 }
  0xd5   :  { %v3132_v22 = vsel %vm122_vm3, 1.0, %v4140_v19  ;;  %v3131_v23 = vsel %vm121_vm4, 1.0, %v4140_v19 }
  0xd7   :  { %v134_v17 = vpop.permute.xlu1 %133  ;;  %v131_v18 = vpop.permute.xlu0 %130 }
  0xd8   :  { %vm136_vm5 = vcmp.eq.s32.totalorder %v4353_v16, %v134_v17  ;;  %vm135_vm6 = vcmp.eq.s32.totalorder %v4353_v16, %v131_v18 }
  0xd9   :  { %v3134_v20 = vsel %vm136_vm5, 1.0, %v4140_v19  ;;  %v3133_v21 = vsel %vm135_vm6, 1.0, %v4140_v19 }
  0xda   :  { %v142_v26 = vadd.f32 %v3134_v20, %v3132_v22  ;;  %v141_v27 = vadd.f32 %v3133_v21, %v3131_v23  ;;  %v4427_v22 = vld [vmem:[#allocation3] sm:$0xff] }
  0xdb   :  { %v150_v24 = vpop.permute.xlu1 %149  ;;  %v147_v25 = vpop.permute.xlu0 %146 }
  0xdc   :  { %vm152_vm7 = vcmp.eq.s32.totalorder %v4353_v16, %v150_v24  ;;  %vm151_vm8 = vcmp.eq.s32.totalorder %v4353_v16, %v147_v25  ;;  %v4429_v24 = vld [vmem:[#allocation3 + $0x8] sm:$0xff] }
  0xdd   :  { %v3136_v28 = vsel %vm152_vm7, 1.0, %v4140_v19  ;;  %v3135_v29 = vsel %vm151_vm8, 1.0, %v4140_v19 }
  0xde   :  { %v158_v30 = vadd.f32 %v3136_v28, %v142_v26  ;;  %v157_v31 = vadd.f32 %v3135_v29, %v141_v27 }
  0xe0   :  { %3396 = vmatprep.mubr.msk.f32.mxu0 %vm163_vm9, %v157_v31 }
  0xe1   :  { %3397 = vmatmul.mubr.msk.f32.vlgmr.msra.gmra.mrb[0].mxu0 %vm163_vm9, %v158_v30 }
 0x1b4   :  { %v3398_v32 = vpop.f32.mrb[0].mxu0 }
 0x1b5   :  { %v240_v33 = vpop.f32.mrb[1].mxu0  ;;  %v255_v34 = vsel %vm251_vm10, %v3398_v32, 0.0 }
 0x1b6   :  { %256 = vadd.xlane.f32.xlu1 %v255_v34  ;;  %v252_v35 = vsel %vm251_vm10, %v240_v33, 0.0 }
 0x1b7   :  { %253 = vadd.xlane.f32.xlu0 %v252_v35 }
 0x243   :  { %v257_v36 = vpop.xlane.xlu1 %256 }
 0x244   :  { %v260_v37 = vmul.f32 0.03125, %v257_v36  ;;  %v254_v38 = vpop.xlane.xlu0 %253 }
 0x245   :  { %v259_v39 = vmul.f32 0.03125, %v254_v38 }
 0x246   :  { %v262_v40 = vsub.f32 %v3398_v32, %v260_v37 }
 0x247   :  { %v261_v41 = vsub.f32 %v240_v33, %v259_v39 }
 0x248   :  { %v264_v44 = vmul.f32 %v262_v40, %v262_v40 }
 0x249   :  { %v263_v42 = vmul.f32 %v261_v41, %v261_v41 }
 0x24a   :  { %v268_v45 = vsel %vm251_vm10, %v264_v44, 0.0 }
 0x24b   :  { %v265_v43 = vsel %vm251_vm10, %v263_v42, 0.0 }
 0x24c   :  { %266 = vadd.xlane.f32.xlu0 %v265_v43 }
 0x250   :  { %269 = vadd.xlane.f32.xlu0 %v268_v45 }
 0x2d9   :  { %v267_v52 = vpop.xlane.xlu0 %266 }
 0x2da   :  { %v271_v53 = vmul.f32 0.03125, %v267_v52 }
 0x2dc   :  { %v273_v54 = vadd.f32 1e-12, %v271_v53 }
 0x2dd   :  { %v270_v55 = vpop.xlane.xlu0 %269 }
 0x2de   :  { %3919 = vrsqrt.f32 %v273_v54  ;;  %v272_v56 = vmul.f32 0.03125, %v270_v55 }
 0x2e0   :  { %v274_v57 = vadd.f32 1e-12, %v272_v56 }
 0x2e2   :  { %3921 = vrsqrt.f32 %v274_v57 }
 0x2e8   :  { %v3920_v58 = vpop.eup %3919 }
 0x2e9   :  { %v277_v60 = vmul.f32 %v3920_v58, %v261_v41 }
 0x2eb   :  { %v285_v62 = vmul.f32 %v3140_v59, %v277_v60 }
 0x2ec   :  { %v3922_v63 = vpop.eup %3921 }
 0x2ed   :  { %v278_v0 = vmul.f32 %v3922_v63, %v262_v40  ;;  %v4386_v1 = vadd.f32 %v3141_v61, %v285_v62 }
 0x2ef   :  { %v286_v2 = vmul.f32 %v3140_v59, %v278_v0  ;;  %3407 = vmatprep.mubr.msk.f32.mxu1 %vm251_vm10, %v4386_v1 }
 0x2f1   :  { %v4390_v3 = vadd.f32 %v3141_v61, %v286_v2 }
 0x2f3   :  { %3408 = vmatmul.mubr.msk.f32.vlgmr.msra.gmra.mrb[0].mxu1 %vm251_vm10, %v4390_v3 }
 0x3c6   :  { %v3409_v5 = vpop.f32.mrb[0].mxu1 }
 0x3c7   :  { %v4397_v6 = vadd.f32 %v3409_v5, %v3142_v4  ;;  %v380_v7 = vpop.f32.mrb[1].mxu1 }
 0x3c8   :  { %v4399_v8 = vadd.f32 %v3142_v4, %v380_v7 }
 0x3ca   :  { %3414 = vmatprep.mubr.msk.f32.mxu0 %vm395_vm11, %v4399_v8  ;;  %v4405_v9 = vpack.i.bf16 %v4397_v6, %v4399_v8 }
 0x3cc   :  { %3840 = vrot.lane.b32.xlu1 %v4405_v9, %s4141_s19 }
 0x3d0   :  { %3845 = vrot.lane.b32.xlu1 %v4405_v9, %s4142_s29 }
 0x3d4   :  { %591 = vrot.lane.b32.xlu1 %v4399_v8, %s4143_s1 }
 0x3d8   :  { %593 = vrot.lane.b32.xlu1 %v4397_v6, %s4143_s1 }
 0x43e   :  { %v3841_v10 = vpop.permute.xlu1 %3840 }
 0x43f   :  { %v3843_v11 = vunpack.i.h.bf16 %v3841_v10  ;;  %v3842_v12 = vunpack.i.l.bf16 %v3841_v10 }
 0x441   :  { %v3651_v15 = vpack.c.bf16 %v3843_v11, %v3842_v12 }
 0x442   :  { %v3846_v17 = vpop.permute.xlu1 %3845 }
 0x443   :  { %v3848_v18 = vunpack.i.h.bf16 %v3846_v17  ;;  %v3847_v20 = vunpack.i.l.bf16 %v3846_v17  ;;  %3653 = vmatprep.subr.msk.bf16.mxu0 %vm4417_vm12, %v3651_v15 }
 0x444   :  { %3656 = vmatpush3.bf16.xpose.msk.msra.mxu0 %vm4417_vm12, %v3651_v15 }
 0x445   :  { %v3657_v21 = vpack.c.bf16 %v3848_v18, %v3847_v20 }
 0x446   :  { %v592_v50 = vpop.permute.xlu1 %591 }
 0x447   :  { %3658 = vmatprep.subr.bf16.mxu1 %v3657_v21 }
 0x448   :  { %3660 = vmatpush3.bf16.msra.mxu1 %v3657_v21 }
 0x44a   :  { %v594_v51 = vpop.permute.xlu1 %593 }
 0x44b   :  { %3415 = vmatmul.mubr.msk.f32.vlgmr.msra.gmra.mrb[2].mxu0 %vm395_vm11, %v4397_v6 }
 0x51e   :  { %v3416_v23 = vpop.f32.mrb[2].mxu0 }
 0x51f   :  { %v470_v25 = vpop.f32.mrb[3].mxu0  ;;  %v476_v27 = vadd.f32 %v3416_v23, %v4429_v24 }
 0x520   :  { %v471_v26 = vadd.f32 %v470_v25, %v4427_v22 }
 0x521   :  { %v483_v29 = vsel %vm479_vm13, %v476_v27, -inf }
 0x522   :  { %v480_v28 = vsel %vm479_vm13, %v471_v26, -inf }
 0x523   :  { %481 = vmax.xlane.f32.xlu0 %v480_v28 }
 0x527   :  { %484 = vmax.xlane.f32.xlu0 %v483_v29 }
 0x5b0   :  { %v482_v30 = vpop.xlane.xlu0 %481 }
 0x5b1   :  { %v486_v31 = vsub.f32 %v471_v26, %v482_v30 }
 0x5b3   :  { %v488_v34 = vmul.f32 1.442695, %v486_v31 }
 0x5b4   :  { %v485_v32 = vpop.xlane.xlu0 %484 }
 0x5b5   :  { %v487_v33 = vsub.f32 %v476_v27, %v485_v32 }
 0x5b7   :  { %v490_v35 = vmul.f32 1.442695, %v487_v33 }
 0x5b9   :  { %3923 = vpow2.f32 %v490_v35 }
 0x5ba   :  { %3925 = vpow2.f32 %v488_v34 }
 0x5c3   :  { %v3924_v36 = vpop.eup %3923 }
 0x5c4   :  { %v495_v37 = vsel %vm479_vm13, %v3924_v36, 0.0  ;;  %v3926_v38 = vpop.eup %3925 }
 0x5c5   :  { %496 = vadd.xlane.f32.xlu0 %v495_v37  ;;  %v492_v39 = vsel %vm479_vm13, %v3926_v38, 0.0 }
 0x5c9   :  { %493 = vadd.xlane.f32.xlu0 %v492_v39 }
 0x5df   :  { %3850 = vrot.lane.b32.xlu0 %v4405_v9, %s4144_s6 }
 0x652   :  { %v497_v40 = vpop.xlane.xlu0 %496 }
 0x653   :  { %3927 = vrcp.f32 %v497_v40 }
 0x656   :  { %v494_v41 = vpop.xlane.xlu0 %493 }
 0x657   :  { %3929 = vrcp.f32 %v494_v41 }
 0x65a   :  { %v3851_v42 = vpop.permute.xlu0 %3850 }
 0x65b   :  { %v3853_v43 = vunpack.i.h.bf16 %v3851_v42  ;;  %v3852_v44 = vunpack.i.l.bf16 %v3851_v42 }
 0x65d   :  { %v3661_v45 = vpack.c.bf16 %v3853_v43, %v3852_v44  ;;  %v3928_v46 = vpop.eup %3927 }
 0x65e   :  { %v501_v49 = vmul.f32 %v3928_v46, %v3924_v36 }
 0x65f   :  { %3663 = vmatprep.subr.msk.bf16.mxu1 %vm4417_vm12, %v3661_v45 }
 0x661   :  { %v3930_v47 = vpop.eup %3929 }
 0x662   :  { %v500_v48 = vmul.f32 %v3930_v47, %v3926_v38 }
 0x664   :  { %3421 = vmatprep.mubr.msk.f32.mxu1 %vm479_vm13, %v500_v48 }
 0x665   :  { %3422 = vmatmul.mubr.msk.f32.vlgmr.msra.gmra.mrb[2].mxu1 %vm479_vm13, %v501_v49 }
 0x666   :  { %3666 = vmatpush3.bf16.xpose.msk.msra.mxu1 %vm4417_vm12, %v3661_v45  ;;  %3428 = vmatprep.mubr.msk.f32.mxu1 %vm395_vm11, %v592_v50 }
 0x66d   :  { %3429 = vmatmul.mubr.msk.f32.vlgmr.msra.gmra.mrb[4].mxu1 %vm395_vm11, %v594_v51 }
 0x738   :  { %v3423_v52 = vpop.f32.mrb[2].mxu1 }
 0x739   :  { %590 = vst.msk [vmem:[#allocation2 + $0x8] sm:$0xff] %vm395_vm11, %v3423_v52  ;;  %v580_v53 = vpop.f32.mrb[3].mxu1 }
 0x73a   :  { %589 = vst.msk [vmem:[#allocation2] sm:$0xff] %vm395_vm11, %v580_v53 }
 0x740   :  { %v3430_v54 = vpop.f32.mrb[4].mxu1 }
 0x741   :  { %v679_v55 = vadd.f32 %v3430_v54, %v4429_v24  ;;  %v673_v56 = vpop.f32.mrb[5].mxu1 }
 0x742   :  { %v674_v57 = vadd.f32 %v673_v56, %v4427_v22 }
 0x743   :  { %v685_v58 = vsel %vm479_vm13, %v679_v55, -inf }
 0x744   :  { %686 = vmax.xlane.f32.xlu0 %v685_v58  ;;  %v682_v59 = vsel %vm479_vm13, %v674_v57, -inf }
 0x745   :  { %683 = vmax.xlane.f32.xlu1 %v682_v59 }
 0x756   :  { %3860 = vrot.lane.b32.xlu1 %v4405_v9, %s4145_s25 }
 0x75a   :  { %3855 = vrot.lane.b32.xlu0 %v4405_v9, %s4146_s26 }
 0x75e   :  { %804 = vrot.lane.b32.xlu0 %v4397_v6, %s4147_s30 }
 0x7d1   :  { %v687_v60 = vpop.xlane.xlu0 %686 }
 0x7d2   :  { %v689_v61 = vsub.f32 %v679_v55, %v687_v60  ;;  %v684_v62 = vpop.xlane.xlu1 %683 }
 0x7d3   :  { %v688_v63 = vsub.f32 %v674_v57, %v684_v62 }
 0x7d4   :  { %v692_v0 = vmul.f32 1.442695, %v689_v61 }
 0x7d5   :  { %v690_v2 = vmul.f32 1.442695, %v688_v63  ;;  %v3856_v4 = vpop.permute.xlu0 %3855 }
 0x7d6   :  { %3931 = vpow2.f32 %v692_v0  ;;  %v3858_v5 = vunpack.i.h.bf16 %v3856_v4  ;;  %v3857_v7 = vunpack.i.l.bf16 %v3856_v4  ;;  %v3861_v10 = vpop.permute.xlu1 %3860 }
 0x7d7   :  { %v3863_v11 = vunpack.i.h.bf16 %v3861_v10  ;;  %v3862_v12 = vunpack.i.l.bf16 %v3861_v10  ;;  %3933 = vpow2.f32 %v690_v2 }
 0x7d8   :  { %v3667_v15 = vpack.c.bf16 %v3858_v5, %v3857_v7 }
 0x7d9   :  { %v3671_v17 = vpack.c.bf16 %v3863_v11, %v3862_v12  ;;  %v805_v32 = vpop.permute.xlu0 %804 }
 0x7da   :  { %3668 = vmatprep.subr.bf16.mxu0 %v3667_v15 }
 0x7db   :  { %3670 = vmatpush3.bf16.msra.mxu0 %v3667_v15 }
 0x7dc   :  { %3673 = vmatprep.subr.msk.bf16.mxu0 %vm4417_vm12, %v3671_v17 }
 0x7e0   :  { %v3932_v18 = vpop.eup %3931 }
 0x7e1   :  { %v697_v20 = vsel %vm479_vm13, %v3932_v18, 0.0  ;;  %v3934_v21 = vpop.eup %3933 }
 0x7e2   :  { %698 = vadd.xlane.f32.xlu1 %v697_v20  ;;  %v694_v23 = vsel %vm479_vm13, %v3934_v21, 0.0 }
 0x7e6   :  { %695 = vadd.xlane.f32.xlu1 %v694_v23 }
 0x7f7   :  { %802 = vrot.lane.b32.xlu1 %v4399_v8, %s4147_s30 }
 0x86f   :  { %v699_v25 = vpop.xlane.xlu1 %698 }
 0x870   :  { %3935 = vrcp.f32 %v699_v25 }
 0x873   :  { %v696_v26 = vpop.xlane.xlu1 %695 }
 0x874   :  { %3937 = vrcp.f32 %v696_v26 }
 0x877   :  { %v803_v31 = vpop.permute.xlu1 %802 }
 0x87a   :  { %v3936_v27 = vpop.eup %3935 }
 0x87b   :  { %v703_v30 = vmul.f32 %v3936_v27, %v3932_v18 }
 0x87e   :  { %v3938_v28 = vpop.eup %3937 }
 0x87f   :  { %v702_v29 = vmul.f32 %v3938_v28, %v3934_v21 }
 0x881   :  { %3435 = vmatprep.mubr.msk.f32.mxu0 %vm479_vm13, %v702_v29 }
 0x882   :  { %3436 = vmatmul.mubr.msk.f32.vlgmr.msra.gmra.mrb[4].mxu0 %vm479_vm13, %v703_v30 }
 0x883   :  { %3676 = vmatpush3.bf16.xpose.msk.msra.mxu0 %vm4417_vm12, %v3671_v17  ;;  %3442 = vmatprep.mubr.msk.f32.mxu0 %vm395_vm11, %v803_v31 }
 0x88a   :  { %3443 = vmatmul.mubr.msk.f32.vlgmr.msra.gmra.mrb[6].mxu0 %vm395_vm11, %v805_v32 }
 0x955   :  { %v4471_v33 = vpop.f32.mrb[4].mxu0 }
 0x956   :  { %v4473_v34 = vpop.f32.mrb[5].mxu0 }
 0x95d   :  { %v3444_v35 = vpop.f32.mrb[6].mxu0 }
 0x95e   :  { %v890_v36 = vadd.f32 %v3444_v35, %v4429_v24  ;;  %v884_v37 = vpop.f32.mrb[7].mxu0 }
 0x95f   :  { %v885_v38 = vadd.f32 %v884_v37, %v4427_v22 }
 0x960   :  { %v896_v39 = vsel %vm479_vm13, %v890_v36, -inf }
 0x961   :  { %897 = vmax.xlane.f32.xlu0 %v896_v39  ;;  %v893_v40 = vsel %vm479_vm13, %v885_v38, -inf }
 0x962   :  { %894 = vmax.xlane.f32.xlu1 %v893_v40 }
 0x9ee   :  { %v898_v41 = vpop.xlane.xlu0 %897 }
 0x9ef   :  { %v900_v42 = vsub.f32 %v890_v36, %v898_v41  ;;  %v895_v43 = vpop.xlane.xlu1 %894 }
 0x9f0   :  { %v899_v44 = vsub.f32 %v885_v38, %v895_v43  ;;  %v1226_v43 = vld [vmem:[%s4878_s9] sm:$0xff] }
 0x9f1   :  { %v903_v45 = vmul.f32 1.442695, %v900_v42 }
 0x9f2   :  { %v901_v46 = vmul.f32 1.442695, %v899_v44  ;;  %v1227_v44 = vld [vmem:[%s4878_s9 + $0x8] sm:$0xff] }
 0x9f3   :  { %3939 = vpow2.f32 %v903_v45  ;;  %v3691_v45 = vpack.c.bf16 %v1227_v44, %v1226_v43  ;;  %v1471_v44 = vld [vmem:[%s4884_s15 + $0x20] sm:$0xff] }
 0x9f4   :  { %3941 = vpow2.f32 %v901_v46  ;;  %v1228_v46 = vld [vmem:[%s4878_s9 + $0x10] sm:$0xff] }
 0x9fd   :  { %v3940_v47 = vpop.eup %3939 }
 0x9fe   :  { %v3942_v48 = vpop.eup %3941  ;;  %v908_v49 = vsel %vm479_vm13, %v3940_v47, 0.0 }
 0x9ff   :  { %909 = vadd.xlane.f32.xlu1 %v908_v49  ;;  %v905_v50 = vsel %vm479_vm13, %v3942_v48, 0.0 }
 0xa00   :  { %906 = vadd.xlane.f32.xlu0 %v905_v50 }
 0xa10   :  { %3870 = vrot.lane.b32.xlu1 %v4405_v9, %s4148_s0 }
 0xa14   :  { %1013 = vrot.lane.b32.xlu1 %v4399_v8, %s4149_s2 }
 0xa16   :  { %3865 = vrot.lane.b32.xlu0 %v4405_v9, %s4905_s27 }
 0xa1a   :  { %1015 = vrot.lane.b32.xlu0 %v4397_v6, %s4149_s2 }
 0xa8c   :  { %v910_v51 = vpop.xlane.xlu1 %909 }
 0xa8d   :  { %3943 = vrcp.f32 %v910_v51  ;;  %v907_v52 = vpop.xlane.xlu0 %906 }
 0xa8e   :  { %3945 = vrcp.f32 %v907_v52 }
 0xa90   :  { %v3871_v53 = vpop.permute.xlu1 %3870 }
 0xa91   :  { %v3866_v54 = vpop.permute.xlu0 %3865  ;;  %v3873_v55 = vunpack.i.h.bf16 %v3871_v53  ;;  %v3872_v56 = vunpack.i.l.bf16 %v3871_v53 }
 0xa92   :  { %v3868_v57 = vunpack.i.h.bf16 %v3866_v54  ;;  %v3867_v58 = vunpack.i.l.bf16 %v3866_v54 }
 0xa93   :  { %v3681_v60 = vpack.c.bf16 %v3873_v55, %v3872_v56  ;;  %v3169_v55 = vld [vmem:[%s4879_s10] ss:$0 sm:$0xff] }
 0xa94   :  { %v3677_v59 = vpack.c.bf16 %v3868_v57, %v3867_v58  ;;  %v1014_v63 = vpop.permute.xlu1 %1013 }
 0xa95   :  { %v1016_v0 = vpop.permute.xlu0 %1015 }
 0xa96   :  { %3678 = vmatprep.subr.bf16.mxu1 %v3677_v59 }
 0xa97   :  { %v3944_v8 = vpop.eup %3943  ;;  %3680 = vmatpush3.bf16.msra.mxu1 %v3677_v59 }
 0xa98   :  { %v3946_v61 = vpop.eup %3945  ;;  %3683 = vmatprep.subr.msk.bf16.mxu1 %vm4417_vm12, %v3681_v60  ;;  %v914_v62 = vmul.f32 %v3944_v8, %v3940_v47  ;;  %v1229_v47 = vld [vmem:[%s4878_s9 + $0x18] sm:$0xff] }
 0xa99   :  { %v913_v6 = vmul.f32 %v3946_v61, %v3942_v48  ;;  %v3695_v48 = vpack.c.bf16 %v1229_v47, %v1228_v46  ;;  %v1473_v47 = vld [vmem:[%s4884_s15 + $0x30] sm:$0xff] }
 0xa9b   :  { %3449 = vmatprep.mubr.msk.f32.mxu1 %vm479_vm13, %v913_v6 }
 0xa9c   :  { %3450 = vmatmul.mubr.msk.f32.vlgmr.msra.gmra.mrb[6].mxu1 %vm479_vm13, %v914_v62 }
 0xa9d   :  { %3456 = vmatprep.mubr.msk.f32.mxu1 %vm395_vm11, %v1014_v63 }
 0xaa0   :  { %3686 = vmatpush3.bf16.xpose.msk.msra.mxu1 %vm4417_vm12, %v3681_v60 }
 0xaa7   :  { %3457 = vmatmul.mubr.msk.f32.vlgmr.msra.gmra.mrb[8].mxu1 %vm395_vm11, %v1016_v0 }
 0xb6f   :  { %v3451_v2 = vpop.f32.mrb[6].mxu1 }
 0xb70   :  { %v993_v4 = vpop.f32.mrb[7].mxu1 }
 0xb7a   :  { %v3458_v5 = vpop.f32.mrb[8].mxu1 }
 0xb7b   :  { %v1101_v7 = vadd.f32 %v3458_v5, %v4429_v24  ;;  %v1095_v10 = vpop.f32.mrb[9].mxu1 }
 0xb7c   :  { %v1096_v11 = vadd.f32 %v1095_v10, %v4427_v22 }
 0xb7d   :  { %v1107_v12 = vsel %vm479_vm13, %v1101_v7, -inf }
 0xb7e   :  { %1108 = vmax.xlane.f32.xlu0 %v1107_v12  ;;  %v1104_v15 = vsel %vm479_vm13, %v1096_v11, -inf  ;;  %v1365_v12 = vld [vmem:[%s4882_s13 + $0x8] sm:$0xff] }
 0xb7f   :  { %1105 = vmax.xlane.f32.xlu1 %v1104_v15 }
 0xc0b   :  { %v1109_v17 = vpop.xlane.xlu0 %1108 }
 0xc0c   :  { %v1111_v18 = vsub.f32 %v1101_v7, %v1109_v17  ;;  %v1106_v20 = vpop.xlane.xlu1 %1105  ;;  %v1366_v17 = vld [vmem:[%s4882_s13 + $0x10] sm:$0xff] }
 0xc0d   :  { %v1110_v21 = vsub.f32 %v1096_v11, %v1106_v20 }
 0xc0e   :  { %v1114_v23 = vmul.f32 1.442695, %v1111_v18  ;;  %v1367_v18 = vld [vmem:[%s4882_s13 + $0x18] sm:$0xff] }
 0xc0f   :  { %v1112_v25 = vmul.f32 1.442695, %v1110_v21  ;;  %v3703_v20 = vpack.c.bf16 %v1367_v18, %v1366_v17 }
 0xc10   :  { %3947 = vpow2.f32 %v1114_v23 }
 0xc11   :  { %3949 = vpow2.f32 %v1112_v25 }
 0xc1a   :  { %v3948_v26 = vpop.eup %3947 }
 0xc1b   :  { %v3950_v27 = vpop.eup %3949  ;;  %v1119_v28 = vsel %vm479_vm13, %v3948_v26, 0.0 }
 0xc1c   :  { %1120 = vadd.xlane.f32.xlu1 %v1119_v28  ;;  %v1116_v29 = vsel %vm479_vm13, %v3950_v27, 0.0 }
 0xc1d   :  { %1117 = vadd.xlane.f32.xlu0 %v1116_v29 }
 0xc2d   :  { %793 = vrot.lane.b32.xlu1 %v4473_v34, %s4903_s23 }
 0xc31   :  { %795 = vrot.lane.b32.xlu1 %v4471_v33, %s4903_s23  ;;  %s4929_s23 = smov 24  }
 0xc33   :  { %3875 = vrot.lane.b32.xlu0 %v4405_v9, %s4902_s22 }
 0xc35   :  { %1006 = vrot.lane.b32.xlu1 %v3451_v2, %s4900_s3 }
 0xc37   :  { %1004 = vrot.lane.b32.xlu0 %v993_v4, %s4900_s3 }
 0xca9   :  { %v1121_v30 = vpop.xlane.xlu1 %1120 }
 0xcaa   :  { %3951 = vrcp.f32 %v1121_v30  ;;  %v1118_v31 = vpop.xlane.xlu0 %1117  ;;  %v3172_v30 = vld [vmem:[%s4880_s11] ss:$0 sm:$0xff] }
 0xcab   :  { %3953 = vrcp.f32 %v1118_v31 }
 0xcad   :  { %v794_v32 = vpop.permute.xlu1 %793 }
 0xcae   :  { %800 = vst.msk [vmem:[#allocation2] sm:$0xff] %vm799_vm14, %v794_v32  ;;  %v3876_v34 = vpop.permute.xlu0 %3875  ;;  %v3173_v32 = vld [vmem:[%s4881_s12] ss:$0 sm:$0xff] }
 0xcaf   :  { %v3878_v35 = vunpack.i.h.bf16 %v3876_v34  ;;  %v3877_v33 = vunpack.i.l.bf16 %v3876_v34 }
 0xcb1   :  { %v3687_v36 = vpack.c.bf16 %v3878_v35, %v3877_v33  ;;  %v796_v37 = vpop.permute.xlu1 %795 }
 0xcb2   :  { %801 = vst.msk [vmem:[#allocation2 + $0x8] sm:$0xff] %vm799_vm14, %v796_v37  ;;  %v1005_v9 = vpop.permute.xlu0 %1004 }
 0xcb3   :  { %1011 = vst.msk [vmem:[#allocation2] sm:$0xff] %vm1010_vm15, %v1005_v9  ;;  %3688 = vmatprep.subr.bf16.mxu0 %v3687_v36 }
 0xcb4   :  { %v3952_v38 = vpop.eup %3951  ;;  %3690 = vmatpush3.bf16.msra.mxu0 %v3687_v36 }
 0xcb5   :  { %v3954_v39 = vpop.eup %3953  ;;  %v1007_v40 = vpop.permute.xlu1 %1006  ;;  %v1125_v42 = vmul.f32 %v3952_v38, %v3948_v26  ;;  %3692 = vmatprep.subr.bf16.mxu0 %v3691_v45  ;;  %v1467_v38 = vld [vmem:[%s4884_s15] sm:$0xff] }
 0xcb6   :  { %1012 = vst.msk [vmem:[#allocation2 + $0x8] sm:$0xff] %vm1010_vm15, %v1007_v40  ;;  %v1124_v41 = vmul.f32 %v3954_v39, %v3950_v27  ;;  %v1468_v39 = vld [vmem:[%s4884_s15 + $0x8] sm:$0xff] }
 0xcb7   :  { %v3707_v40 = vpack.c.bf16 %v1468_v39, %v1467_v38  ;;  %v3180_v39 = vld [vmem:[%s4886_s17] ss:$0 sm:$0xff] }
 0xcb8   :  { %3463 = vmatprep.mubr.msk.f32.mxu0 %vm479_vm13, %v1124_v41  ;;  %v1469_v41 = vld [vmem:[%s4884_s15 + $0x10] sm:$0xff] }
 0xcb9   :  { %3464 = vmatmul.mubr.msk.f32.vlgmr.msra.gmra.mrb[8].mxu0 %vm479_vm13, %v1125_v42  ;;  %v1470_v42 = vld [vmem:[%s4884_s15 + $0x18] sm:$0xff] }
 0xcba   :  { %3694 = vmatpush3.bf16.msra.mxu0 %v3691_v45  ;;  %v3711_v43 = vpack.c.bf16 %v1470_v42, %v1469_v41  ;;  %v1472_v45 = vld [vmem:[%s4884_s15 + $0x28] sm:$0xff]  ;;  %v3181_v42 = vld [vmem:[%s4887_s18] ss:$0 sm:$0xff] }
 0xcbb   :  { %3696 = vmatprep.subr.bf16.mxu0 %v3695_v48  ;;  %v3715_v46 = vpack.c.bf16 %v1472_v45, %v1471_v44 }
 0xcbe   :  { %3698 = vmatpush3.bf16.msra.mxu0 %v3695_v48  ;;  %v1474_v48 = vld [vmem:[%s4884_s15 + $0x38] sm:$0xff] }
 0xcbf   :  { %3708 = vmatprep.subr.bf16.mxu0 %v3707_v40 }
 0xd8c   :  { %v3465_v49 = vpop.f32.mrb[8].mxu0 }
 0xd8d   :  { %1217 = vrot.lane.b32.xlu1 %v3465_v49, %s4906_s4  ;;  %v1204_v50 = vpop.f32.mrb[9].mxu0  ;;  %v3719_v49 = vpack.c.bf16 %v1474_v48, %v1473_v47  ;;  %v3187_v48 = vld [vmem:[%s4877_s8 + $0x1] ss:$0 sm:$0xff]  ;;  %s4925_s8 = smov 48  }
 0xd8e   :  { %1215 = vrot.lane.b32.xlu0 %v1204_v50, %s4906_s4  ;;  %v3174_v50 = vld [vmem:[%s4883_s14] ss:$0 sm:$0xff] }
 0xdff   :  { %v1218_v51 = vpop.permute.xlu1 %1217 }
 0xe00   :  { %1223 = vst.msk [vmem:[#allocation2 + $0x8] sm:$0xff] %vm1221_vm0, %v1218_v51  ;;  %v1216_v52 = vpop.permute.xlu0 %1215 }
 0xe01   :  { %1222 = vst.msk [vmem:[#allocation2] sm:$0xff] %vm1221_vm0, %v1216_v52 }
 0xe07   :  { %v1225_v54 = vld [vmem:[#allocation2 + $0x8] sm:$0xff] }
 0xe08   :  { %v1224_v53 = vld [vmem:[#allocation2] sm:$0xff] }
 0xe09   :  { %3474 = vmatprep.mubr.msk.f32.mxu0 %vm251_vm10, %v1224_v53 }
 0xe0a   :  { %3475 = vmatmul.mubr.msk.f32.vlgmr.msra.gmra.mrb[10].mxu0 %vm251_vm10, %v1225_v54 }
 0xe0b   :  { %3710 = vmatpush3.bf16.msra.mxu0 %v3707_v40 }
 0xe0c   :  { %3712 = vmatprep.subr.bf16.mxu0 %v3711_v43 }
 0xe0f   :  { %3714 = vmatpush3.bf16.msra.mxu0 %v3711_v43 }
 0xe10   :  { %3716 = vmatprep.subr.bf16.mxu0 %v3715_v46 }
 0xe13   :  { %3718 = vmatpush3.bf16.msra.mxu0 %v3715_v46 }
 0xe14   :  { %3720 = vmatprep.subr.bf16.mxu0 %v3719_v49 }
 0xe17   :  { %3722 = vmatpush3.bf16.msra.mxu0 %v3719_v49 }
 0xedd   :  { %v3476_v56 = vpop.f32.mrb[10].mxu0 }
 0xede   :  { %v1315_v57 = vadd.f32 %v3476_v56, %v3169_v55  ;;  %v1309_v58 = vpop.f32.mrb[11].mxu0 }
 0xedf   :  { %v1310_v59 = vadd.f32 %v3169_v55, %v1309_v58 }
 0xee0   :  { %v1319_v60 = vadd.f32 %v1315_v57, %v4390_v3 }
 0xee1   :  { %v1318_v8 = vadd.f32 %v1310_v59, %v4386_v1  ;;  %v1364_v1 = vld [vmem:[%s4882_s13] sm:$0xff] }
 0xee2   :  { %v1325_v61 = vsel %vm251_vm10, %v1319_v60, 0.0  ;;  %v3699_v15 = vpack.c.bf16 %v1365_v12, %v1364_v1 }
 0xee3   :  { %1326 = vadd.xlane.f32.xlu1 %v1325_v61  ;;  %v1322_v6 = vsel %vm251_vm10, %v1318_v8, 0.0 }
 0xee4   :  { %1323 = vadd.xlane.f32.xlu0 %v1322_v6  ;;  %3700 = vmatprep.subr.bf16.mxu1 %v3699_v15 }
 0xee5   :  { %3702 = vmatpush3.bf16.msra.mxu1 %v3699_v15 }
 0xee6   :  { %3704 = vmatprep.subr.bf16.mxu1 %v3703_v20 }
 0xee9   :  { %3706 = vmatpush3.bf16.msra.mxu1 %v3703_v20 }
 0xf70   :  { %v1327_v62 = vpop.xlane.xlu1 %1326 }
 0xf71   :  { %v1329_v63 = vmul.f32 0.03125, %v1327_v62  ;;  %v1324_v0 = vpop.xlane.xlu0 %1323 }
 0xf72   :  { %v1328_v2 = vmul.f32 0.03125, %v1324_v0 }
 0xf73   :  { %v1331_v4 = vsub.f32 %v1319_v60, %v1329_v63  ;;  %v3177_v63 = vld [vmem:[%s4885_s16] ss:$0 sm:$0xff] }
 0xf74   :  { %v1330_v5 = vsub.f32 %v1318_v8, %v1328_v2 }
 0xf75   :  { %v1333_v11 = vmul.f32 %v1331_v4, %v1331_v4 }
 0xf76   :  { %v1332_v7 = vmul.f32 %v1330_v5, %v1330_v5 }
 0xf77   :  { %v1337_v3 = vsel %vm251_vm10, %v1333_v11, 0.0 }
 0xf78   :  { %v1334_v10 = vsel %vm251_vm10, %v1332_v7, 0.0 }
 0xf79   :  { %1335 = vadd.xlane.f32.xlu0 %v1334_v10 }
 0xf7d   :  { %1338 = vadd.xlane.f32.xlu0 %v1337_v3 }
0x1006   :  { %v1336_v21 = vpop.xlane.xlu0 %1335 }
0x1007   :  { %v1340_v23 = vmul.f32 0.03125, %v1336_v21 }
0x1009   :  { %v1342_v25 = vadd.f32 1e-12, %v1340_v23 }
0x100a   :  { %v1339_v26 = vpop.xlane.xlu0 %1338 }
0x100b   :  { %3955 = vrsqrt.f32 %v1342_v25  ;;  %v1341_v27 = vmul.f32 0.03125, %v1339_v26 }
0x100d   :  { %v1343_v28 = vadd.f32 1e-12, %v1341_v27  ;;  %v3182_v27 = vld [vmem:[%s4876_s7 + $0x20] sm:$0xff] }
0x100f   :  { %3957 = vrsqrt.f32 %v1343_v28  ;;  %v3183_v28 = vld [vmem:[%s4876_s7 + $0x28] sm:$0xff] }
0x1015   :  { %v3956_v29 = vpop.eup %3955 }
0x1016   :  { %v1346_v31 = vmul.f32 %v3956_v29, %v1330_v5  ;;  %v3723_v29 = vpack.c.bf16 %v3183_v28, %v3182_v27 }
0x1018   :  { %v1354_v34 = vmul.f32 %v3172_v30, %v1346_v31  ;;  %3724 = vmatprep.subr.bf16.mxu1 %v3723_v29  ;;  %v3185_v31 = vld [vmem:[%s4876_s7 + $0x38] sm:$0xff] }
0x1019   :  { %v3958_v35 = vpop.eup %3957 }
0x101a   :  { %v1347_v33 = vmul.f32 %v3958_v35, %v1331_v4  ;;  %v1362_v36 = vadd.f32 %v3173_v32, %v1354_v34 }
0x101c   :  { %v1355_v37 = vmul.f32 %v3172_v30, %v1347_v33  ;;  %3485 = vmatprep.mubr.msk.f32.mxu1 %vm251_vm10, %v1362_v36  ;;  %v3184_v30 = vld [vmem:[%s4876_s7 + $0x30] sm:$0xff] }
0x101e   :  { %v1363_v9 = vadd.f32 %v3173_v32, %v1355_v37  ;;  %v3727_v32 = vpack.c.bf16 %v3185_v31, %v3184_v30 }
0x1020   :  { %3486 = vmatmul.mubr.msk.f32.vlgmr.msra.gmra.mrb[10].mxu1 %vm251_vm10, %v1363_v9 }
0x1021   :  { %3726 = vmatpush3.bf16.msra.mxu1 %v3723_v29 }
0x1022   :  { %3728 = vmatprep.subr.bf16.mxu1 %v3727_v32 }
0x1025   :  { %3730 = vmatpush3.bf16.msra.mxu1 %v3727_v32 }
0x10f3   :  { %v3487_v51 = vpop.f32.mrb[10].mxu1 }
0x10f4   :  { %v1453_v52 = vadd.f32 %v3487_v51, %v3174_v50  ;;  %v1447_v53 = vpop.f32.mrb[11].mxu1 }
0x10f5   :  { %v1448_v54 = vadd.f32 %v3174_v50, %v1447_v53 }
0x10f6   :  { %v1460_v55 = vmul.f32 0.70710677, %v1453_v52  ;;  %v1457_v61 = vmul.f32 0.5, %v1453_v52 }
0x10f7   :  { %v1459_v56 = vmul.f32 0.70710677, %v1448_v54  ;;  %v1456_v60 = vmul.f32 0.5, %v1448_v54 }
0x10f8   :  { %3959 = verf.f32 %v1460_v55 }
0x10f9   :  { %3961 = verf.f32 %v1459_v56 }
0x1102   :  { %v3960_v57 = vpop.eup %3959 }
0x1103   :  { %v3962_v58 = vpop.eup %3961  ;;  %v1464_v59 = vadd.f32 1.0, %v3960_v57 }
0x1104   :  { %v1463_v8 = vadd.f32 1.0, %v3962_v58 }
0x1105   :  { %v1466_v62 = vmul.f32 %v1464_v59, %v1457_v61 }
0x1106   :  { %v1465_v6 = vmul.f32 %v1463_v8, %v1456_v60 }
0x1108   :  { %3504 = vmatprep.mubr.msk.f32.mxu0 %vm1482_vm1, %v1465_v6 }
0x1109   :  { %3505 = vmatmul.mubr.msk.f32.vlgmr.msra.gmra.mrb[12].mxu0 %vm1482_vm1, %v1466_v62 }
0x11dc   :  { %v3506_v0 = vpop.f32.mrb[12].mxu0 }
0x11dd   :  { %v1561_v2 = vadd.f32 %v3506_v0, %v3177_v63  ;;  %v1555_v4 = vpop.f32.mrb[13].mxu0 }
0x11de   :  { %v1556_v5 = vadd.f32 %v3177_v63, %v1555_v4 }
0x11df   :  { %v1565_v7 = vadd.f32 %v1561_v2, %v1363_v9 }
0x11e0   :  { %v1564_v10 = vadd.f32 %v1556_v5, %v1362_v36 }
0x11e1   :  { %v1571_v11 = vsel %vm251_vm10, %v1565_v7, 0.0 }
0x11e2   :  { %1572 = vadd.xlane.f32.xlu0 %v1571_v11  ;;  %v1568_v3 = vsel %vm251_vm10, %v1564_v10, 0.0 }
0x11e3   :  { %1569 = vadd.xlane.f32.xlu1 %v1568_v3 }
0x126f   :  { %v1573_v1 = vpop.xlane.xlu0 %1572 }
0x1270   :  { %v1575_v12 = vmul.f32 0.03125, %v1573_v1  ;;  %v1570_v15 = vpop.xlane.xlu1 %1569 }
0x1271   :  { %v1574_v17 = vmul.f32 0.03125, %v1570_v15 }
0x1272   :  { %v1577_v18 = vsub.f32 %v1565_v7, %v1575_v12 }
0x1273   :  { %v1576_v20 = vsub.f32 %v1564_v10, %v1574_v17 }
0x1274   :  { %v1579_v21 = vmul.f32 %v1577_v18, %v1577_v18 }
0x1275   :  { %v1578_v23 = vmul.f32 %v1576_v20, %v1576_v20 }
0x1276   :  { %v1583_v25 = vsel %vm251_vm10, %v1579_v21, 0.0 }
0x1277   :  { %1584 = vadd.xlane.f32.xlu0 %v1583_v25  ;;  %v1580_v26 = vsel %vm251_vm10, %v1578_v23, 0.0 }
0x1278   :  { %1581 = vadd.xlane.f32.xlu1 %v1580_v26 }
0x1304   :  { %v1585_v34 = vpop.xlane.xlu0 %1584 }
0x1305   :  { %v1587_v35 = vmul.f32 0.03125, %v1585_v34  ;;  %v1582_v33 = vpop.xlane.xlu1 %1581 }
0x1306   :  { %v1586_v36 = vmul.f32 0.03125, %v1582_v33 }
0x1307   :  { %v1589_v37 = vadd.f32 1e-12, %v1587_v35 }
0x1308   :  { %v1588_v9 = vadd.f32 1e-12, %v1586_v36 }
0x1309   :  { %3963 = vrsqrt.f32 %v1589_v37 }
0x130a   :  { %3965 = vrsqrt.f32 %v1588_v9 }
0x1313   :  { %v3964_v38 = vpop.eup %3963 }
0x1314   :  { %v3966_v40 = vpop.eup %3965  ;;  %v1593_v41 = vmul.f32 %v3964_v38, %v1577_v18 }
0x1315   :  { %v1592_v43 = vmul.f32 %v3966_v40, %v1576_v20 }
0x1316   :  { %v1601_v44 = vmul.f32 %v3180_v39, %v1593_v41 }
0x1317   :  { %v1600_v45 = vmul.f32 %v3180_v39, %v1592_v43 }
0x1318   :  { %v4618_v46 = vadd.f32 %v3181_v42, %v1601_v44 }
0x1319   :  { %v4620_v47 = vadd.f32 %v3181_v42, %v1600_v45 }
0x131a   :  { %1611 = vst.msk [vmem:[#allocation9 + $0x8] sm:$0xff] %vm251_vm10, %v4618_v46 }
0x131b   :  { %3515 = vmatprep.mubr.msk.f32.mxu1 %vm251_vm10, %v4620_v47  ;;  %1610 = vst.msk [vmem:[#allocation9] sm:$0xff] %vm251_vm10, %v4620_v47 }
0x131c   :  { %3516 = vmatmul.mubr.msk.f32.vlgmr.msra.gmra.mrb[12].mxu1 %vm251_vm10, %v4618_v46 }
0x13ef   :  { %v3517_v49 = vpop.f32.mrb[12].mxu1 }
0x13f0   :  { %v4633_v50 = vadd.f32 %v3517_v49, %v3187_v48  ;;  %v1697_v51 = vpop.f32.mrb[13].mxu1 }
0x13f1   :  { %v4635_v52 = vadd.f32 %v3187_v48, %v1697_v51 }
0x13f3   :  { %3522 = vmatprep.mubr.msk.f32.mxu1 %vm395_vm11, %v4635_v52  ;;  %v4641_v53 = vpack.i.bf16 %v4633_v50, %v4635_v52 }
0x13f5   :  { %3885 = vrot.lane.b32.xlu0 %v4641_v53, %s4144_s6  ;;  %3880 = vrot.lane.b32.xlu1 %v4641_v53, %s4141_s19  ;;  %s4926_s19 = smov 8  }
0x13f9   :  { %1906 = vrot.lane.b32.xlu1 %v4635_v52, %s4143_s1 }
0x13fd   :  { %1908 = vrot.lane.b32.xlu1 %v4633_v50, %s4143_s1  ;;  %s4928_s1 = smov 16  }
0x1467   :  { %v3886_v54 = vpop.permute.xlu0 %3885  ;;  %v3881_v55 = vpop.permute.xlu1 %3880 }
0x1468   :  { %v3888_v56 = vunpack.i.h.bf16 %v3886_v54  ;;  %v3887_v57 = vunpack.i.l.bf16 %v3886_v54  ;;  %v3883_v58 = vunpack.i.h.bf16 %v3881_v55  ;;  %v3882_v59 = vunpack.i.l.bf16 %v3881_v55 }
0x146a   :  { %v3731_v60 = vpack.c.bf16 %v3883_v58, %v3882_v59  ;;  %v3741_v8 = vpack.c.bf16 %v3888_v56, %v3887_v57 }
0x146b   :  { %v1907_v61 = vpop.permute.xlu1 %1906 }
0x146c   :  { %3733 = vmatprep.subr.msk.bf16.mxu1 %vm4417_vm12, %v3731_v60 }
0x146d   :  { %3736 = vmatpush3.bf16.xpose.msk.msra.mxu1 %vm4417_vm12, %v3731_v60 }
0x146e   :  { %3743 = vmatprep.subr.msk.bf16.mxu1 %vm4417_vm12, %v3741_v8 }
0x146f   :  { %v1909_v6 = vpop.permute.xlu1 %1908 }
0x1474   :  { %3523 = vmatmul.mubr.msk.f32.vlgmr.msra.gmra.mrb[14].mxu1 %vm395_vm11, %v4633_v50 }
0x1475   :  { %3746 = vmatpush3.bf16.xpose.msk.msra.mxu1 %vm4417_vm12, %v3741_v8  ;;  %3536 = vmatprep.mubr.msk.f32.mxu1 %vm395_vm11, %v1907_v61 }
0x147c   :  { %3537 = vmatmul.mubr.msk.f32.vlgmr.msra.gmra.mrb[16].mxu1 %vm395_vm11, %v1909_v6 }
0x1547   :  { %v3524_v62 = vpop.f32.mrb[14].mxu1 }
0x1548   :  { %v1792_v63 = vadd.f32 %v3524_v62, %v4429_v24  ;;  %v1786_v0 = vpop.f32.mrb[15].mxu1 }
0x1549   :  { %v1787_v2 = vadd.f32 %v1786_v0, %v4427_v22 }
0x154a   :  { %v1798_v4 = vsel %vm479_vm13, %v1792_v63, -inf }
0x154b   :  { %1799 = vmax.xlane.f32.xlu1 %v1798_v4  ;;  %v1795_v5 = vsel %vm479_vm13, %v1787_v2, -inf }
0x154c   :  { %1796 = vmax.xlane.f32.xlu0 %v1795_v5 }
0x154f   :  { %v3538_v7 = vpop.f32.mrb[16].mxu1 }
0x1550   :  { %v1988_v10 = vpop.f32.mrb[17].mxu1  ;;  %v1994_v3 = vadd.f32 %v3538_v7, %v4429_v24 }
0x1551   :  { %v1989_v11 = vadd.f32 %v1988_v10, %v4427_v22 }
0x1552   :  { %v2000_v12 = vsel %vm479_vm13, %v1994_v3, -inf }
0x1553   :  { %v1997_v1 = vsel %vm479_vm13, %v1989_v11, -inf }
0x1554   :  { %1998 = vmax.xlane.f32.xlu0 %v1997_v1 }
0x1558   :  { %2001 = vmax.xlane.f32.xlu0 %v2000_v12  ;;  %v4014_v12 = vld [vmem:[#allocation3] sm:$0xff] }
0x155c   :  { %3890 = vrot.lane.b32.xlu1 %v4641_v53, %s4142_s29  ;;  %s4927_s29 = smov 40  }
0x15d8   :  { %v1800_v15 = vpop.xlane.xlu1 %1799 }
0x15d9   :  { %v1802_v17 = vsub.f32 %v1792_v63, %v1800_v15  ;;  %v1797_v18 = vpop.xlane.xlu0 %1796 }
0x15da   :  { %v1801_v20 = vsub.f32 %v1787_v2, %v1797_v18 }
0x15db   :  { %v1805_v21 = vmul.f32 1.442695, %v1802_v17 }
0x15dc   :  { %v1803_v23 = vmul.f32 1.442695, %v1801_v20  ;;  %v3891_v25 = vpop.permute.xlu1 %3890 }
0x15dd   :  { %3967 = vpow2.f32 %v1805_v21  ;;  %v3893_v22 = vunpack.i.h.bf16 %v3891_v25  ;;  %v3892_v26 = vunpack.i.l.bf16 %v3891_v25 }
0x15de   :  { %3969 = vpow2.f32 %v1803_v23 }
0x15df   :  { %v3737_v24 = vpack.c.bf16 %v3893_v22, %v3892_v26 }
0x15e1   :  { %3738 = vmatprep.subr.bf16.mxu0 %v3737_v24  ;;  %v1999_v27 = vpop.xlane.xlu0 %1998 }
0x15e2   :  { %3740 = vmatpush3.bf16.msra.mxu0 %v3737_v24  ;;  %v2003_v37 = vsub.f32 %v1989_v11, %v1999_v27  ;;  %v4013_v11 = vld [vmem:[#allocation3 + $0x8] sm:$0xff] }
0x15e4   :  { %v2005_v9 = vmul.f32 1.442695, %v2003_v37 }
0x15e5   :  { %v2002_v28 = vpop.xlane.xlu0 %2001 }
0x15e6   :  { %v2004_v29 = vsub.f32 %v1994_v3, %v2002_v28 }
0x15e7   :  { %v3968_v30 = vpop.eup %3967 }
0x15e8   :  { %v3970_v31 = vpop.eup %3969  ;;  %v2007_v32 = vmul.f32 1.442695, %v2004_v29  ;;  %v1810_v34 = vsel %vm479_vm13, %v3968_v30, 0.0 }
0x15e9   :  { %1811 = vadd.xlane.f32.xlu0 %v1810_v34  ;;  %v1807_v35 = vsel %vm479_vm13, %v3970_v31, 0.0 }
0x15ea   :  { %3971 = vpow2.f32 %v2007_v32  ;;  %1808 = vadd.xlane.f32.xlu1 %v1807_v35 }
0x15eb   :  { %3973 = vpow2.f32 %v2005_v9 }
0x15f4   :  { %v3972_v33 = vpop.eup %3971 }
0x15f5   :  { %v2012_v36 = vsel %vm479_vm13, %v3972_v33, 0.0  ;;  %v3974_v38 = vpop.eup %3973 }
0x15f6   :  { %2013 = vadd.xlane.f32.xlu0 %v2012_v36  ;;  %v2009_v39 = vsel %vm479_vm13, %v3974_v38, 0.0 }
0x15fb   :  { %3900 = vrot.lane.b32.xlu1 %v4641_v53, %s4145_s25 }
0x160c   :  { %3895 = vrot.lane.b32.xlu0 %v4641_v53, %s4146_s26 }
0x1610   :  { %2118 = vrot.lane.b32.xlu0 %v4633_v50, %s4147_s30 }
0x161f   :  { %2010 = vadd.xlane.f32.xlu1 %v2009_v39 }
0x1630   :  { %2116 = vrot.lane.b32.xlu1 %v4635_v52, %s4147_s30 }
0x1676   :  { %v1812_v40 = vpop.xlane.xlu0 %1811 }
0x1677   :  { %3975 = vrcp.f32 %v1812_v40  ;;  %v1809_v41 = vpop.xlane.xlu1 %1808 }
0x1678   :  { %3977 = vrcp.f32 %v1809_v41 }
0x167b   :  { %v3901_v49 = vpop.permute.xlu1 %3900 }
0x167c   :  { %v3903_v54 = vunpack.i.h.bf16 %v3901_v49  ;;  %v3902_v55 = vunpack.i.l.bf16 %v3901_v49 }
0x167e   :  { %v3751_v59 = vpack.c.bf16 %v3903_v54, %v3902_v55 }
0x1681   :  { %v3976_v42 = vpop.eup %3975 }
0x1682   :  { %v3978_v43 = vpop.eup %3977  ;;  %v1816_v48 = vmul.f32 %v3976_v42, %v3968_v30 }
0x1683   :  { %v2014_v44 = vpop.xlane.xlu0 %2013  ;;  %v1815_v45 = vmul.f32 %v3978_v43, %v3970_v31 }
0x1684   :  { %3979 = vrcp.f32 %v2014_v44 }
0x1685   :  { %3529 = vmatprep.mubr.msk.f32.mxu0 %vm479_vm13, %v1815_v45 }
0x1686   :  { %3530 = vmatmul.mubr.msk.f32.vlgmr.msra.gmra.mrb[14].mxu0 %vm479_vm13, %v1816_v48 }
0x1687   :  { %v3896_v51 = vpop.permute.xlu0 %3895 }
0x1688   :  { %v3898_v56 = vunpack.i.h.bf16 %v3896_v51  ;;  %v3897_v57 = vunpack.i.l.bf16 %v3896_v51 }
0x168a   :  { %v3747_v58 = vpack.c.bf16 %v3898_v56, %v3897_v57 }
0x168b   :  { %v2119_v0 = vpop.permute.xlu0 %2118 }
0x168c   :  { %3748 = vmatprep.subr.bf16.mxu0 %v3747_v58 }
0x168d   :  { %3750 = vmatpush3.bf16.msra.mxu0 %v3747_v58 }
0x168e   :  { %3753 = vmatprep.subr.msk.bf16.mxu0 %vm4417_vm12, %v3751_v59  ;;  %v3980_v8 = vpop.eup %3979 }
0x168f   :  { %v2018_v62 = vmul.f32 %v3980_v8, %v3972_v33 }
0x16ac   :  { %v2011_v60 = vpop.xlane.xlu1 %2010 }
0x16ad   :  { %3981 = vrcp.f32 %v2011_v60 }
0x16b0   :  { %v2117_v63 = vpop.permute.xlu1 %2116 }
0x16b7   :  { %v3982_v61 = vpop.eup %3981 }
0x16b8   :  { %v2017_v6 = vmul.f32 %v3982_v61, %v3974_v38 }
0x16ba   :  { %3543 = vmatprep.mubr.msk.f32.mxu0 %vm479_vm13, %v2017_v6 }
0x16bb   :  { %3544 = vmatmul.mubr.msk.f32.vlgmr.msra.gmra.mrb[16].mxu0 %vm479_vm13, %v2018_v62 }
0x16bc   :  { %3756 = vmatpush3.bf16.xpose.msk.msra.mxu0 %vm4417_vm12, %v3751_v59  ;;  %3550 = vmatprep.mubr.msk.f32.mxu0 %vm395_vm11, %v2117_v63 }
0x16c3   :  { %3551 = vmatmul.mubr.msk.f32.vlgmr.msra.gmra.mrb[18].mxu0 %vm395_vm11, %v2119_v0 }
0x1759   :  { %v3531_v2 = vpop.f32.mrb[14].mxu0 }
0x175a   :  { %1905 = vst.msk [vmem:[#allocation2 + $0x8] sm:$0xff] %vm395_vm11, %v3531_v2  ;;  %v1895_v4 = vpop.f32.mrb[15].mxu0 }
0x175b   :  { %1904 = vst.msk [vmem:[#allocation2] sm:$0xff] %vm395_vm11, %v1895_v4 }
0x178e   :  { %v4697_v5 = vpop.f32.mrb[16].mxu0 }
0x178f   :  { %v4699_v7 = vpop.f32.mrb[17].mxu0 }
0x1796   :  { %v3552_v10 = vpop.f32.mrb[18].mxu0 }
0x1797   :  { %v2204_v3 = vadd.f32 %v4013_v11, %v3552_v10  ;;  %v2198_v1 = vpop.f32.mrb[19].mxu0 }
0x1798   :  { %v2199_v15 = vadd.f32 %v4014_v12, %v2198_v1 }
0x1799   :  { %v2210_v17 = vsel %vm479_vm13, %v2204_v3, -inf }
0x179a   :  { %2211 = vmax.xlane.f32.xlu0 %v2210_v17  ;;  %v2207_v18 = vsel %vm479_vm13, %v2199_v15, -inf }
0x179b   :  { %2208 = vmax.xlane.f32.xlu1 %v2207_v18  ;;  %v3214_v18 = vld [vmem:[%s4878_s9 + $0x20] sm:$0xff] }
0x1827   :  { %v2212_v20 = vpop.xlane.xlu0 %2211 }
0x1828   :  { %v2214_v21 = vsub.f32 %v2204_v3, %v2212_v20  ;;  %v2209_v23 = vpop.xlane.xlu1 %2208  ;;  %v3215_v20 = vld [vmem:[%s4878_s9 + $0x28] sm:$0xff] }
0x1829   :  { %v2213_v25 = vsub.f32 %v2199_v15, %v2209_v23  ;;  %v3216_v23 = vld [vmem:[%s4878_s9 + $0x30] sm:$0xff] }
0x182a   :  { %v2217_v22 = vmul.f32 1.442695, %v2214_v21  ;;  %v3771_v21 = vpack.c.bf16 %v3215_v20, %v3214_v18  ;;  %v3240_v20 = vld [vmem:[%s4884_s15 + $0x70] sm:$0xff] }
0x182b   :  { %v2215_v26 = vmul.f32 1.442695, %v2213_v25  ;;  %v3217_v25 = vld [vmem:[%s4878_s9 + $0x38] sm:$0xff] }
0x182c   :  { %3983 = vpow2.f32 %v2217_v22  ;;  %v3775_v22 = vpack.c.bf16 %v3217_v25, %v3216_v23  ;;  %v3231_v25 = vld [vmem:[%s4883_s14 + $0x1] ss:$0 sm:$0xff] }
0x182d   :  { %3985 = vpow2.f32 %v2215_v26 }
0x1836   :  { %v3984_v24 = vpop.eup %3983 }
0x1837   :  { %v3986_v27 = vpop.eup %3985  ;;  %v2222_v28 = vsel %vm479_vm13, %v3984_v24, 0.0 }
0x1838   :  { %2223 = vadd.xlane.f32.xlu1 %v2222_v28  ;;  %v2219_v29 = vsel %vm479_vm13, %v3986_v27, 0.0 }
0x1839   :  { %2220 = vadd.xlane.f32.xlu0 %v2219_v29 }
0x1849   :  { %3910 = vrot.lane.b32.xlu1 %v4641_v53, %s4148_s0 }
0x184d   :  { %2326 = vrot.lane.b32.xlu1 %v4635_v52, %s4149_s2 }
0x184f   :  { %3905 = vrot.lane.b32.xlu0 %v4641_v53, %s4925_s8 }
0x1853   :  { %2328 = vrot.lane.b32.xlu0 %v4633_v50, %s4149_s2 }
0x18c5   :  { %v2224_v30 = vpop.xlane.xlu1 %2223 }
0x18c6   :  { %3987 = vrcp.f32 %v2224_v30  ;;  %v2221_v31 = vpop.xlane.xlu0 %2220 }
0x18c7   :  { %3989 = vrcp.f32 %v2221_v31  ;;  %v3219_v31 = vld [vmem:[%s4879_s10 + $0x1] ss:$0 sm:$0xff] }
0x18c9   :  { %v3911_v32 = vpop.permute.xlu1 %3910 }
0x18ca   :  { %v3906_v34 = vpop.permute.xlu0 %3905  ;;  %v3913_v35 = vunpack.i.h.bf16 %v3911_v32  ;;  %v3912_v33 = vunpack.i.l.bf16 %v3911_v32 }
0x18cb   :  { %v3908_v36 = vunpack.i.h.bf16 %v3906_v34  ;;  %v3907_v37 = vunpack.i.l.bf16 %v3906_v34 }
0x18cc   :  { %v3761_v38 = vpack.c.bf16 %v3913_v35, %v3912_v33 }
0x18cd   :  { %v3757_v9 = vpack.c.bf16 %v3908_v36, %v3907_v37  ;;  %v2327_v41 = vpop.permute.xlu1 %2326 }
0x18ce   :  { %v2329_v42 = vpop.permute.xlu0 %2328 }
0x18cf   :  { %3758 = vmatprep.subr.bf16.mxu1 %v3757_v9 }
0x18d0   :  { %v3988_v52 = vpop.eup %3987  ;;  %3760 = vmatpush3.bf16.msra.mxu1 %v3757_v9 }
0x18d1   :  { %v3990_v39 = vpop.eup %3989  ;;  %3763 = vmatprep.subr.msk.bf16.mxu1 %vm4417_vm12, %v3761_v38  ;;  %v2228_v40 = vmul.f32 %v3988_v52, %v3984_v24 }
0x18d2   :  { %v2227_v50 = vmul.f32 %v3990_v39, %v3986_v27 }
0x18d4   :  { %3557 = vmatprep.mubr.msk.f32.mxu1 %vm479_vm13, %v2227_v50 }
0x18d5   :  { %3558 = vmatmul.mubr.msk.f32.vlgmr.msra.gmra.mrb[18].mxu1 %vm479_vm13, %v2228_v40 }
0x18d6   :  { %3564 = vmatprep.mubr.msk.f32.mxu1 %vm395_vm11, %v2327_v41 }
0x18d9   :  { %3766 = vmatpush3.bf16.xpose.msk.msra.mxu1 %vm4417_vm12, %v3761_v38 }
0x18e0   :  { %3565 = vmatmul.mubr.msk.f32.vlgmr.msra.gmra.mrb[20].mxu1 %vm395_vm11, %v2329_v42 }
0x19a8   :  { %v3559_v43 = vpop.f32.mrb[18].mxu1 }
0x19a9   :  { %v2307_v44 = vpop.f32.mrb[19].mxu1 }
0x19b3   :  { %v3566_v45 = vpop.f32.mrb[20].mxu1 }
0x19b4   :  { %v2414_v48 = vadd.f32 %v4013_v11, %v3566_v45  ;;  %v2408_v49 = vpop.f32.mrb[21].mxu1 }
0x19b5   :  { %v2409_v51 = vadd.f32 %v4014_v12, %v2408_v49 }
0x19b6   :  { %v2420_v54 = vsel %vm479_vm13, %v2414_v48, -inf }
0x19b7   :  { %2421 = vmax.xlane.f32.xlu0 %v2420_v54  ;;  %v2417_v55 = vsel %vm479_vm13, %v2409_v51, -inf  ;;  %v3229_v54 = vld [vmem:[%s4882_s13 + $0x38] sm:$0xff] }
0x19b8   :  { %2418 = vmax.xlane.f32.xlu1 %v2417_v55 }
0x1a44   :  { %v2422_v56 = vpop.xlane.xlu0 %2421 }
0x1a45   :  { %v2424_v57 = vsub.f32 %v2414_v48, %v2422_v56  ;;  %v2419_v58 = vpop.xlane.xlu1 %2418  ;;  %v3227_v48 = vld [vmem:[%s4882_s13 + $0x28] sm:$0xff] }
0x1a46   :  { %v2423_v14 = vsub.f32 %v2409_v51, %v2419_v58  ;;  %v3228_v51 = vld [vmem:[%s4882_s13 + $0x30] sm:$0xff] }
0x1a47   :  { %v2427_v59 = vmul.f32 1.442695, %v2424_v57  ;;  %v3783_v55 = vpack.c.bf16 %v3229_v54, %v3228_v51 }
0x1a48   :  { %v2425_v60 = vmul.f32 1.442695, %v2423_v14 }
0x1a49   :  { %3991 = vpow2.f32 %v2427_v59 }
0x1a4a   :  { %3993 = vpow2.f32 %v2425_v60 }
0x1a53   :  { %v3992_v8 = vpop.eup %3991 }
0x1a54   :  { %v3994_v61 = vpop.eup %3993  ;;  %v2432_v6 = vsel %vm479_vm13, %v3992_v8, 0.0 }
0x1a55   :  { %2433 = vadd.xlane.f32.xlu1 %v2432_v6  ;;  %v2429_v62 = vsel %vm479_vm13, %v3994_v61, 0.0 }
0x1a56   :  { %2430 = vadd.xlane.f32.xlu0 %v2429_v62  ;;  %v3225_v62 = vld [vmem:[%s4881_s12 + $0x1] ss:$0 sm:$0xff] }
0x1a66   :  { %2108 = vrot.lane.b32.xlu1 %v4699_v7, %s4926_s19 }
0x1a6a   :  { %2110 = vrot.lane.b32.xlu1 %v4697_v5, %s4926_s19 }
0x1a6c   :  { %3915 = vrot.lane.b32.xlu0 %v4641_v53, %s4927_s29 }
0x1a6e   :  { %2320 = vrot.lane.b32.xlu1 %v3559_v43, %s4928_s1 }
0x1a70   :  { %2318 = vrot.lane.b32.xlu0 %v2307_v44, %s4928_s1 }
0x1ae2   :  { %v2434_v63 = vpop.xlane.xlu1 %2433 }
0x1ae3   :  { %3995 = vrcp.f32 %v2434_v63  ;;  %v2431_v0 = vpop.xlane.xlu0 %2430 }
0x1ae4   :  { %3997 = vrcp.f32 %v2431_v0 }
0x1ae6   :  { %v2109_v2 = vpop.permute.xlu1 %2108 }
0x1ae7   :  { %2114 = vst.msk [vmem:[#allocation2] sm:$0xff] %vm799_vm14, %v2109_v2  ;;  %v3916_v4 = vpop.permute.xlu0 %3915 }
0x1ae8   :  { %v3918_v10 = vunpack.i.h.bf16 %v3916_v4  ;;  %v3917_v7 = vunpack.i.l.bf16 %v3916_v4 }
0x1aea   :  { %v3767_v11 = vpack.c.bf16 %v3918_v10, %v3917_v7  ;;  %v2111_v3 = vpop.permute.xlu1 %2110 }
0x1aeb   :  { %2115 = vst.msk [vmem:[#allocation2 + $0x8] sm:$0xff] %vm799_vm14, %v2111_v3  ;;  %v2319_v5 = vpop.permute.xlu0 %2318  ;;  %v3235_v3 = vld [vmem:[%s4884_s15 + $0x48] sm:$0xff] }
0x1aec   :  { %2324 = vst.msk [vmem:[#allocation2] sm:$0xff] %vm1010_vm15, %v2319_v5  ;;  %3768 = vmatprep.subr.bf16.mxu0 %v3767_v11 }
0x1aed   :  { %v3996_v53 = vpop.eup %3995  ;;  %3770 = vmatpush3.bf16.msra.mxu0 %v3767_v11  ;;  %v3234_v11 = vld [vmem:[%s4884_s15 + $0x40] sm:$0xff] }
0x1aee   :  { %v3998_v1 = vpop.eup %3997  ;;  %v2321_v12 = vpop.permute.xlu1 %2320  ;;  %v2438_v17 = vmul.f32 %v3996_v53, %v3992_v8  ;;  %3772 = vmatprep.subr.bf16.mxu0 %v3771_v21  ;;  %v3787_v5 = vpack.c.bf16 %v3235_v3, %v3234_v11  ;;  %v3236_v53 = vld [vmem:[%s4884_s15 + $0x50] sm:$0xff] }
0x1aef   :  { %2325 = vst.msk [vmem:[#allocation2 + $0x8] sm:$0xff] %vm1010_vm15, %v2321_v12  ;;  %v2437_v15 = vmul.f32 %v3998_v1, %v3994_v61  ;;  %v3224_v61 = vld [vmem:[%s4880_s11 + $0x1] ss:$0 sm:$0xff]  ;;  %v3237_v1 = vld [vmem:[%s4884_s15 + $0x58] sm:$0xff] }
0x1af0   :  { %v3791_v12 = vpack.c.bf16 %v3237_v1, %v3236_v53  ;;  %v3013_v1 = vld [vmem:[#allocation8 + $0x8] sm:$0xff] }
0x1af1   :  { %3571 = vmatprep.mubr.msk.f32.mxu0 %vm479_vm13, %v2437_v15  ;;  %v3238_v15 = vld [vmem:[%s4884_s15 + $0x60] sm:$0xff] }
0x1af2   :  { %3572 = vmatmul.mubr.msk.f32.vlgmr.msra.gmra.mrb[20].mxu0 %vm479_vm13, %v2438_v17  ;;  %v3239_v17 = vld [vmem:[%s4884_s15 + $0x68] sm:$0xff] }
0x1af3   :  { %3774 = vmatpush3.bf16.msra.mxu0 %v3771_v21  ;;  %v3795_v18 = vpack.c.bf16 %v3239_v17, %v3238_v15  ;;  %v3241_v21 = vld [vmem:[%s4884_s15 + $0x78] sm:$0xff] }
0x1af4   :  { %3776 = vmatprep.subr.bf16.mxu0 %v3775_v22  ;;  %v3799_v23 = vpack.c.bf16 %v3241_v21, %v3240_v20  ;;  %v3015_v20 = vld [vmem:[#allocation8 + $0x18] sm:$0xff] }
0x1af7   :  { %3778 = vmatpush3.bf16.msra.mxu0 %v3775_v22 }
0x1af8   :  { %3788 = vmatprep.subr.bf16.mxu0 %v3787_v5 }
0x1bc5   :  { %v3573_v26 = vpop.f32.mrb[20].mxu0 }
0x1bc6   :  { %2530 = vrot.lane.b32.xlu1 %v3573_v26, %s4929_s23  ;;  %v2517_v24 = vpop.f32.mrb[21].mxu0 }
0x1bc7   :  { %2528 = vrot.lane.b32.xlu0 %v2517_v24, %s4929_s23 }
0x1c38   :  { %v2531_v27 = vpop.permute.xlu1 %2530 }
0x1c39   :  { %2535 = vst.msk [vmem:[#allocation2 + $0x8] sm:$0xff] %vm1221_vm0, %v2531_v27  ;;  %v2529_v28 = vpop.permute.xlu0 %2528 }
0x1c3a   :  { %2534 = vst.msk [vmem:[#allocation2] sm:$0xff] %vm1221_vm0, %v2529_v28 }
0x1c40   :  { %v2537_v30 = vld [vmem:[#allocation2 + $0x8] sm:$0xff] }
0x1c41   :  { %v2536_v29 = vld [vmem:[#allocation2] sm:$0xff] }
0x1c42   :  { %3582 = vmatprep.mubr.msk.f32.mxu0 %vm251_vm10, %v2536_v29 }
0x1c43   :  { %3583 = vmatmul.mubr.msk.f32.vlgmr.msra.gmra.mrb[22].mxu0 %vm251_vm10, %v2537_v30 }
0x1c44   :  { %3790 = vmatpush3.bf16.msra.mxu0 %v3787_v5 }
0x1c45   :  { %3792 = vmatprep.subr.bf16.mxu0 %v3791_v12 }
0x1c48   :  { %3794 = vmatpush3.bf16.msra.mxu0 %v3791_v12 }
0x1c49   :  { %3796 = vmatprep.subr.bf16.mxu0 %v3795_v18 }
0x1c4c   :  { %3798 = vmatpush3.bf16.msra.mxu0 %v3795_v18  ;;  %v3014_v18 = vld [vmem:[#allocation8 + $0x10] sm:$0xff] }
0x1c4d   :  { %3800 = vmatprep.subr.bf16.mxu0 %v3799_v23  ;;  %v3810_v21 = vpack.c.bf16 %v3015_v20, %v3014_v18 }
0x1c50   :  { %3802 = vmatpush3.bf16.msra.mxu0 %v3799_v23 }
0x1d16   :  { %v3584_v32 = vpop.f32.mrb[22].mxu0 }
0x1d17   :  { %v2629_v34 = vadd.f32 %v3584_v32, %v3219_v31  ;;  %v2623_v35 = vpop.f32.mrb[23].mxu0 }
0x1d18   :  { %v2624_v33 = vadd.f32 %v3219_v31, %v2623_v35 }
0x1d19   :  { %v2633_v36 = vadd.f32 %v2629_v34, %v4618_v46 }
0x1d1a   :  { %v2632_v37 = vadd.f32 %v2624_v33, %v4620_v47  ;;  %v3226_v47 = vld [vmem:[%s4882_s13 + $0x20] sm:$0xff] }
0x1d1b   :  { %v2641_v9 = vsel %vm251_vm10, %v2633_v36, 0.0  ;;  %v3779_v49 = vpack.c.bf16 %v3227_v48, %v3226_v47 }
0x1d1c   :  { %2642 = vadd.xlane.f32.xlu1 %v2641_v9  ;;  %v2638_v38 = vsel %vm251_vm10, %v2632_v37, 0.0  ;;  %v3243_v9 = vld [vmem:[%s4885_s16 + $0x1] ss:$0 sm:$0xff] }
0x1d1d   :  { %2639 = vadd.xlane.f32.xlu0 %v2638_v38  ;;  %3780 = vmatprep.subr.bf16.mxu1 %v3779_v49 }
0x1d1e   :  { %3782 = vmatpush3.bf16.msra.mxu1 %v3779_v49 }
0x1d1f   :  { %3784 = vmatprep.subr.bf16.mxu1 %v3783_v55 }
0x1d22   :  { %3786 = vmatpush3.bf16.msra.mxu1 %v3783_v55 }
0x1da9   :  { %v2643_v52 = vpop.xlane.xlu1 %2642 }
0x1daa   :  { %v2645_v39 = vmul.f32 0.03125, %v2643_v52  ;;  %v2640_v50 = vpop.xlane.xlu0 %2639 }
0x1dab   :  { %v2644_v40 = vmul.f32 0.03125, %v2640_v50 }
0x1dac   :  { %v2647_v41 = vsub.f32 %v2633_v36, %v2645_v39 }
0x1dad   :  { %v2646_v42 = vsub.f32 %v2632_v37, %v2644_v40 }
0x1dae   :  { %v2649_v45 = vmul.f32 %v2647_v41, %v2647_v41 }
0x1daf   :  { %v2648_v43 = vmul.f32 %v2646_v42, %v2646_v42 }
0x1db0   :  { %v2653_v46 = vsel %vm251_vm10, %v2649_v45, 0.0 }
0x1db1   :  { %v2650_v44 = vsel %vm251_vm10, %v2648_v43, 0.0 }
0x1db2   :  { %2651 = vadd.xlane.f32.xlu0 %v2650_v44 }
0x1db6   :  { %2654 = vadd.xlane.f32.xlu0 %v2653_v46 }
0x1e3f   :  { %v2652_v56 = vpop.xlane.xlu0 %2651 }
0x1e40   :  { %v2656_v57 = vmul.f32 0.03125, %v2652_v56 }
0x1e42   :  { %v2658_v58 = vadd.f32 1e-12, %v2656_v57  ;;  %v4154_v57 = vmov 0.0|0.0  }
0x1e43   :  { %v2655_v14 = vpop.xlane.xlu0 %2654  ;;  %3803 = vmatprep.subr.bf16.mxu1 %v4154_v57 }
0x1e44   :  { %3999 = vrsqrt.f32 %v2658_v58  ;;  %v2657_v59 = vmul.f32 0.03125, %v2655_v14 }
0x1e46   :  { %v2659_v60 = vadd.f32 1e-12, %v2657_v59 }
0x1e48   :  { %4001 = vrsqrt.f32 %v2659_v60 }
0x1e4e   :  { %v4000_v8 = vpop.eup %3999 }
0x1e4f   :  { %v2662_v6 = vmul.f32 %v4000_v8, %v2646_v42 }
0x1e51   :  { %v2670_v63 = vmul.f32 %v3224_v61, %v2662_v6  ;;  %v2934_v6 = vshrl.u32 %v111_v13, 7  ;;  %v3012_v13 = vld [vmem:[#allocation8] sm:$0xff] }
0x1e52   :  { %v4002_v0 = vpop.eup %4001  ;;  %v3807_v17 = vpack.c.bf16 %v3013_v1, %v3012_v13 }
0x1e53   :  { %v2663_v2 = vmul.f32 %v4002_v0, %v2647_v41  ;;  %v2678_v4 = vadd.f32 %v3225_v62, %v2670_v63  ;;  %v3248_v63 = vld [vmem:[%s4886_s17 + $0x1] ss:$0 sm:$0xff]  ;;  %v2935_v11 = vmul.u32 8, %v2934_v6  ;;  %s4156_s17 = smov [#allocation9]  }
0x1e55   :  { %v2671_v10 = vmul.f32 %v3224_v61, %v2663_v2  ;;  %3593 = vmatprep.mubr.msk.f32.mxu1 %vm251_vm10, %v2678_v4  ;;  %vm2936_vm3 = vcmp.eq.s32.totalorder %v4353_v16, %v2935_v11 }
0x1e56   :  { %v3250_v15 = vsel %vm2936_vm3, 1.0, %v4140_v19 }
0x1e57   :  { %v2679_v7 = vadd.f32 %v3225_v62, %v2671_v10  ;;  %v3249_v10 = vld [vmem:[%s4887_s18 + $0x1] ss:$0 sm:$0xff]  ;;  %s3104_s18 = sshll.u32 %s4156_s17, 4  ;;  %s3105_s18 = int_to_ptr.vmem [resolvable:$true] %s3104_s18 }
0x1e58   :  { %s4081_s25 = scalar_lea.vmem %s3105_s18, 512  ;;  %p4086_p11 = scmp.lt.s32.totalorder %s3105_s18, %s3105_s18 }
0x1e59   :  { %3594 = vmatmul.mubr.msk.f32.vlgmr.msra.gmra.mrb[22].mxu1 %vm251_vm10, %v2679_v7  ;;  %p4082_p10 = scmp.ne.s32.totalorder %s3105_s18, %s4081_s25  ;;  %p4087_p12 = scmp.lt.s32.totalorder %s4081_s25, %s4081_s25 }
0x1e5a   :  { %3619 = vmatprep.mubr.msk.f32.mxu1 %vm4155_vm2, %v4140_v19 }
0x1e5b   :  { %p4088_p13 = por %p4087_p12, %p4086_p11 }
0x1e5d   :  { %p4089_p0 = pnand %p4088_p13, %p4082_p10 }
0x1f2c   :  { %v3595_v22 = vpop.f32.mrb[22].mxu1 }
0x1f2d   :  { %v2771_v26 = vadd.f32 %v3595_v22, %v3231_v25  ;;  %v2765_v24 = vpop.f32.mrb[23].mxu1 }
0x1f2e   :  { %v2766_v27 = vadd.f32 %v3231_v25, %v2765_v24 }
0x1f2f   :  { %v2777_v28 = vmul.f32 0.70710677, %v2771_v26  ;;  %v2775_v33 = vmul.f32 0.5, %v2771_v26 }
0x1f30   :  { %v2776_v29 = vmul.f32 0.70710677, %v2766_v27  ;;  %v2774_v34 = vmul.f32 0.5, %v2766_v27 }
0x1f31   :  { %4003 = verf.f32 %v2777_v28 }
0x1f32   :  { %4005 = verf.f32 %v2776_v29 }
0x1f3b   :  { %v4004_v30 = vpop.eup %4003 }
0x1f3c   :  { %v4006_v31 = vpop.eup %4005  ;;  %v2781_v32 = vadd.f32 1.0, %v4004_v30 }
0x1f3d   :  { %v2780_v35 = vadd.f32 1.0, %v4006_v31 }
0x1f3e   :  { %v2783_v37 = vmul.f32 %v2781_v32, %v2775_v33 }
0x1f3f   :  { %v2782_v36 = vmul.f32 %v2780_v35, %v2774_v34 }
0x1f41   :  { %3612 = vmatprep.mubr.msk.f32.mxu0 %vm1482_vm1, %v2782_v36 }
0x1f42   :  { %3613 = vmatmul.mubr.msk.f32.vlgmr.msra.gmra.mrb[24].mxu0 %vm1482_vm1, %v2783_v37 }
0x2015   :  { %v3614_v38 = vpop.f32.mrb[24].mxu0 }
0x2016   :  { %v2879_v52 = vadd.f32 %v3614_v38, %v3243_v9  ;;  %v2873_v39 = vpop.f32.mrb[25].mxu0 }
0x2017   :  { %v2874_v50 = vadd.f32 %v3243_v9, %v2873_v39 }
0x2018   :  { %v2883_v40 = vadd.f32 %v2879_v52, %v2679_v7 }
0x2019   :  { %v2882_v41 = vadd.f32 %v2874_v50, %v2678_v4 }
0x201a   :  { %v2891_v42 = vsel %vm251_vm10, %v2883_v40, 0.0 }
0x201b   :  { %2892 = vadd.xlane.f32.xlu0 %v2891_v42  ;;  %v2888_v43 = vsel %vm251_vm10, %v2882_v41, 0.0 }
0x201c   :  { %2889 = vadd.xlane.f32.xlu1 %v2888_v43 }
0x20a8   :  { %v2893_v44 = vpop.xlane.xlu0 %2892 }
0x20a9   :  { %v2895_v45 = vmul.f32 0.03125, %v2893_v44  ;;  %v2890_v46 = vpop.xlane.xlu1 %2889 }
0x20aa   :  { %v2894_v47 = vmul.f32 0.03125, %v2890_v46 }
0x20ab   :  { %v2897_v48 = vsub.f32 %v2883_v40, %v2895_v45 }
0x20ac   :  { %v2896_v49 = vsub.f32 %v2882_v41, %v2894_v47 }
0x20ad   :  { %v2899_v51 = vmul.f32 %v2897_v48, %v2897_v48 }
0x20ae   :  { %v2898_v54 = vmul.f32 %v2896_v49, %v2896_v49 }
0x20af   :  { %v2903_v55 = vsel %vm251_vm10, %v2899_v51, 0.0 }
0x20b0   :  { %2904 = vadd.xlane.f32.xlu0 %v2903_v55  ;;  %v2900_v56 = vsel %vm251_vm10, %v2898_v54, 0.0 }
0x20b1   :  { %2901 = vadd.xlane.f32.xlu1 %v2900_v56 }
0x213d   :  { %v2905_v58 = vpop.xlane.xlu0 %2904 }
0x213e   :  { %v2907_v14 = vmul.f32 0.03125, %v2905_v58  ;;  %v2902_v59 = vpop.xlane.xlu1 %2901 }
0x213f   :  { %v2906_v60 = vmul.f32 0.03125, %v2902_v59 }
0x2140   :  { %v2909_v8 = vadd.f32 1e-12, %v2907_v14 }
0x2141   :  { %v2908_v61 = vadd.f32 1e-12, %v2906_v60 }
0x2142   :  { %4007 = vrsqrt.f32 %v2909_v8 }
0x2143   :  { %4009 = vrsqrt.f32 %v2908_v61 }
0x214c   :  { %v4008_v62 = vpop.eup %4007 }
0x214d   :  { %v4010_v0 = vpop.eup %4009  ;;  %v2913_v2 = vmul.f32 %v4008_v62, %v2897_v48 }
0x214e   :  { %v2912_v4 = vmul.f32 %v4010_v0, %v2896_v49 }
0x214f   :  { %v2921_v7 = vmul.f32 %v3248_v63, %v2913_v2 }
0x2150   :  { %v2920_v3 = vmul.f32 %v3248_v63, %v2912_v4 }
0x2151   :  { %v2929_v5 = vadd.f32 %v3249_v10, %v2921_v7 }
0x2152   :  { %v2928_v53 = vadd.f32 %v3249_v10, %v2920_v3 }
0x2153   :  { %2932 = vst.msk [vmem:[#allocation9 + $0x18] sm:$0xff] %vm251_vm10, %v2929_v5 }
0x2154   :  { %v3804_v12 = vpack.c.bf16 %v2929_v5, %v2928_v53  ;;  %2931 = vst.msk [vmem:[#allocation9 + $0x10] sm:$0xff] %vm251_vm10, %v2928_v53 }
0x2156   :  { %3805 = vmatpush3.bf16.msra.mxu1 %v3804_v12 }
0x2157   :  { %3806 = vmatprep.subr.bf16.mxu1 %v4154_v57 }
0x2159   :  { %3620 = vmatmul.mubr.msk.f32.vlgmr.msra.gmra.mrb[24].mxu1 %vm479_vm13, %v3250_v15 }
0x215a   :  { %3808 = vmatpush3.bf16.msra.mxu1 %v3807_v17  ;;  %3630 = vmatprep.mubr.msk.f32.mxu1 %vm4155_vm2, %v4140_v19 }
0x215b   :  { %3809 = vmatprep.subr.bf16.mxu1 %v4154_v57 }
0x215e   :  { %3811 = vmatpush3.bf16.msra.mxu1 %v3810_v21 }
0x222c   :  { %v3008_v16 = vpop.f32.mrb[24].mxu1 }
0x222d   :  { %v3621_v23 = vpop.f32.mrb[25].mxu1  ;;  %3631 = vmatmul.mubr.msk.f32.vlgmr.msra.gmra.mrb[26].mxu1 %vm251_vm10, %v3008_v16 }
0x222e   :  { %4092 = shalt.err (!%p4089_p0)
}
0x222f   :  { %s4093_s30 = scalar_lea.hbm %s4890_s21, 512 }
0x2230   :  { %p4094_p1 = scmp.ne.s32.totalorder %s4890_s21, %s4093_s30  ;;  %p4097_p2 = scmp.lt.u32.totalorder %s4093_s30, %s4890_s21 }
0x2232   :  { %p4099_p3 = pnand %p4097_p2, %p4094_p1 }
0x2234   :  { %4102 = shalt.err (!%p4099_p3)
}
0x2235   :  { %s4930_s24 = smov 128   ;;  %v3252_v19 = vld [vmem:[%s4889_s20] ss:$0 sm:$0xff]  ;;  %s4157_s10 = smov [#allocation10]   ;;  %vm3097_vm4 = vcmask 254976  }
0x2236   :  { %3110 = dma.vmem_to_hbm [thread:$0]  %s3105_s18, 512, %s4890_s21, [#allocation5], %s4930_s24, %s4930_s24, %s4926_s19  }
0x2237   :  { %s3117_s22 = sshll.u32 %s4157_s10, 4  ;;  %s3118_s22 = int_to_ptr.vmem [resolvable:$true] %s3117_s22 }
0x2238   :  { %s4103_s7 = scalar_lea.vmem %s3118_s22, 32  ;;  %p4108_p5 = scmp.lt.s32.totalorder %s3118_s22, %s3118_s22 }
0x2239   :  { %p4104_p4 = scmp.ne.s32.totalorder %s3118_s22, %s4103_s7  ;;  %p4109_p6 = scmp.lt.s32.totalorder %s4103_s7, %s4103_s7 }
0x223b   :  { %p4110_p7 = por %p4109_p6, %p4108_p5 }
0x223d   :  { %p4111_p8 = pnand %p4110_p7, %p4104_p4 }
0x2300   :  { %v3092_v25 = vpop.f32.mrb[26].mxu1 }
0x2301   :  { %v3093_v22 = vadd.f32 %v3252_v19, %v3092_v25  ;;  %v3632_v26 = vpop.f32.mrb[27].mxu1 }
0x2303   :  { %4011 = vtanh.f32 %v3093_v22 }
0x230d   :  { %v4012_v24 = vpop.eup %4011 }
0x230e   :  { %3098 = vst.msk [vmem:[#allocation10] sm:$0x3] %vm3097_vm4, %v4012_v24 }
0x230f   :  { %4114 = shalt.err (!%p4111_p8)
}
0x2310   :  { %s4931_s20 = sld [smem:[#allocation23_spill]] }
0x2316   :  { %s4115_s3 = scalar_lea.hbm %s4931_s20, 32 }
0x2317   :  { %p4116_p9 = scmp.ne.s32.totalorder %s4931_s20, %s4115_s3  ;;  %p4119_p10 = scmp.lt.u32.totalorder %s4115_s3, %s4931_s20 }
0x2319   :  { %p4121_p11 = pnand %p4119_p10, %p4116_p9 }
0x231b   :  { %4124 = shalt.err (!%p4121_p11)
}
0x231c   :  { %3120 = dma.vmem_to_hbm [thread:$0]  %s3118_s22, 32, %s4931_s20, [#allocation11]  }
0x231d   :  { %4129 = dma.done.wait [#allocation5], 512  }
0x231e   :  { %4130 = vsyncadd [#allocation5], 4294966784 }
0x231f   :  { %4131 = dma.done.wait [#allocation11], 32  }
0x2320   :  { %4132 = vsyncadd [#allocation11], 4294967264 }
0x2321   :  { %3127 = vsyncpa [#allocation4], 1 }
0x2322   :  { %3128 = vsyncpa [#allocation7], 1 }
0x2323   :  { %3129 = vsyncpa [#allocation5], 1 }
0x2324   :  { %3130 = vsyncpa [#allocation11], 1 }

</bundles_post_ra>
